<compile_context>
chip_gen: v7x
topology: tpu7x:2x2x1
jax: 0.10.0
libtpu: 0.0.40
codegen_flags: <defaults>
</compile_context>

<pallas_src>
import functools

import numpy as np

import jax
import jax.numpy as jnp
from jax import lax
from jax.experimental import pallas as pl
from jax.experimental.pallas import tpu as pltpu


# ---------------------------------------------------------------------------
# Static index tables (pure Python/numpy, weight-independent) used to repack
# the PyTorch-layout parameters into matmul-friendly, 128-lane-padded matrices.
# ---------------------------------------------------------------------------
@functools.lru_cache(maxsize=None)
def _conv1_tables():
    # T1[i, w_in, q*128 + b*6 + oc] = conv1_w[oc, 0, i, w_in - (2b+q)]
    sel = np.zeros((5, 32, 256), np.int32)
    msk = np.zeros((5, 32, 256), np.float32)
    for i in range(5):
        for q in range(2):
            for b in range(14):
                for oc in range(6):
                    for j in range(5):
                        w_in = 2 * b + q + j
                        col = q * 128 + b * 6 + oc
                        sel[i, w_in, col] = oc * 25 + i * 5 + j
                        msk[i, w_in, col] = 1.0
    return sel, msk


@functools.lru_cache(maxsize=None)
def _conv2_tables():
    # T2[i, b*6 + ic, q*128 + w*16 + oc] = conv2_w[oc, ic, i, b - (2w+q)]
    sel = np.zeros((3, 128, 256), np.int32)
    msk = np.zeros((3, 128, 256), np.float32)
    for i in range(3):
        for q in range(2):
            for w in range(6):
                for oc in range(16):
                    for ic in range(6):
                        for j in range(3):
                            row = (2 * w + q + j) * 6 + ic
                            col = q * 128 + w * 16 + oc
                            sel[i, row, col] = oc * 54 + ic * 9 + i * 3 + j
                            msk[i, row, col] = 1.0
    return sel, msk


@functools.lru_cache(maxsize=None)
def _fc1_tables():
    # W1r[h, w*16 + c, f] = fc1_w[f, c*36 + h*6 + w]   (folds the NCHW flatten)
    sel = np.zeros((6, 128, 128), np.int32)
    msk = np.zeros((6, 128, 128), np.float32)
    for h in range(6):
        for w in range(6):
            for c in range(16):
                for f in range(120):
                    sel[h, w * 16 + c, f] = f * 576 + c * 36 + h * 6 + w
                    msk[h, w * 16 + c, f] = 1.0
    return sel, msk


def pack_params(params):
    """One-time repack of PyTorch-layout weights into MXU/lane-friendly matrices."""
    f32, bf16 = jnp.float32, jnp.bfloat16

    sel1, msk1 = _conv1_tables()
    t1 = (params["conv1_w"].reshape(-1)[sel1] * msk1).astype(bf16)       # (5, 32, 256)

    sel2, msk2 = _conv2_tables()
    t2 = (params["conv2_w"].reshape(-1)[sel2] * msk2).astype(bf16)       # (3, 128, 256)

    self1, mskf1 = _fc1_tables()
    w1r = (params["fc1_w"].reshape(-1)[self1] * mskf1).astype(bf16)      # (6, 128, 128)

    w2m = jnp.zeros((128, 128), f32).at[:120, :84].set(params["fc2_w"].T).astype(bf16)
    w3m = jnp.zeros((128, 128), f32).at[:84, :10].set(params["fc3_w"].T).astype(bf16)

    b1 = jnp.zeros((1, 128), f32).at[0, :84].set(jnp.tile(params["conv1_b"], 14))
    b2 = jnp.zeros((1, 128), f32).at[0, :96].set(jnp.tile(params["conv2_b"], 6))
    bf1 = jnp.zeros((1, 128), f32).at[0, :120].set(params["fc1_b"])
    bf2 = jnp.zeros((1, 128), f32).at[0, :84].set(params["fc2_b"])
    bf3 = jnp.zeros((1, 128), f32).at[0, :10].set(params["fc3_b"])

    return dict(t1=t1, b1=b1, t2=t2, b2=b2, w1r=w1r, bf1=bf1,
                w2m=w2m, bf2=bf2, w3m=w3m, bf3=bf3)


# ---------------------------------------------------------------------------
# Fully fused LeNet kernel: one grid step = one image, everything in VMEM.
# ---------------------------------------------------------------------------
def _lenet_kernel(xph_ref, t1_ref, b1_ref, t2_ref, b2_ref, w1r_ref, bf1_ref,
                  w2m_ref, bf2_ref, w3m_ref, bf3_ref, out_ref):
    f32 = jnp.float32

    # ---- conv1 (5x5, 1->6) + ReLU + 2x2 max-pool -------------------------
    # pooled1 kept row-phase split (mod 2): p1ph[s][u, b*6+oc] = pool1[oc, 2u+s, b]
    p1ph = []
    for s in range(2):
        row_phase = []
        for p in range(2):                       # pool phase along H
            acc = None
            for i in range(5):                   # conv kernel row
                o = 2 * s + p + i                # input row = 4u + o
                lhs = xph_ref[0, o % 4, (o // 4):(o // 4) + 7, :]          # (7, 32) bf16
                t = jnp.dot(lhs, t1_ref[i], preferred_element_type=f32)    # (7, 256)
                acc = t if acc is None else acc + t
            row_phase.append(acc)
        m = jnp.maximum(row_phase[0], row_phase[1])       # max over H pool phase
        m = jnp.maximum(m[:, 0:128], m[:, 128:256])       # max over W pool phase
        p1ph.append(jnp.maximum(m + b1_ref[...], 0.0).astype(jnp.bfloat16))   # (7, 128)

    # ---- conv2 (3x3, 6->16) + ReLU + 2x2 max-pool ------------------------
    row_phase = []
    for p in range(2):
        acc = None
        for i in range(3):
            o = p + i                            # pooled1 row = 2h + o
            lhs = p1ph[o % 2][(o // 2):(o // 2) + 6, :]                    # (6, 128) bf16
            t = jnp.dot(lhs, t2_ref[i], preferred_element_type=f32)        # (6, 256)
            acc = t if acc is None else acc + t
        row_phase.append(acc)
    m = jnp.maximum(row_phase[0], row_phase[1])
    m = jnp.maximum(m[:, 0:128], m[:, 128:256])
    pooled2 = jnp.maximum(m + b2_ref[...], 0.0).astype(jnp.bfloat16)       # (6, 128)

    # ---- fc1 (576->120) + ReLU (NCHW flatten folded into w1r) ------------
    acc = bf1_ref[...]                                                     # (1, 128) f32
    for h in range(6):
        acc = acc + jnp.dot(pooled2[h:h + 1, :], w1r_ref[h],
                            preferred_element_type=f32)
    h1 = jnp.maximum(acc, 0.0).astype(jnp.bfloat16)                        # (1, 128)

    # ---- fc2 (120->84) + ReLU --------------------------------------------
    h2 = jnp.maximum(
        bf2_ref[...] + jnp.dot(h1, w2m_ref[...], preferred_element_type=f32), 0.0
    ).astype(jnp.bfloat16)                                                 # (1, 128)

    # ---- fc3 (84->10), 128-lane padded ------------------------------------
    out = bf3_ref[...] + jnp.dot(h2, w3m_ref[...], preferred_element_type=f32)
    out_ref[0] = out.astype(out_ref.dtype)


def lenet_forward(x_nchw, packed):
    """x_nchw: (N, 1, 32, 32) f32 -> logits (N, 10) f32, in ONE pallas_call."""
    n = x_nchw.shape[0]
    x = x_nchw[:, 0, :, :]                                                 # (N, 32, 32)
    # mod-4 row-phase split (pure re-layout, 1x traffic): xph[n, r, m, w] = x[n, 4m+r, w]
    xph = jnp.stack([x[:, r::4, :] for r in range(4)], axis=1)             # (N, 4, 8, 32)
    xph = xph.astype(jnp.bfloat16)

    def full(shape):
        return pl.BlockSpec(shape, lambda i: (0,) * len(shape))

    out = pl.pallas_call(
        _lenet_kernel,
        out_shape=jax.ShapeDtypeStruct((n, 1, 128), jnp.float32),
        grid=(n,),
        in_specs=[
            pl.BlockSpec((1, 4, 8, 32), lambda i: (i, 0, 0, 0)),   # input row-phases
            full((5, 32, 256)), full((1, 128)),                    # conv1 T-matrices, bias
            full((3, 128, 256)), full((1, 128)),                   # conv2 T-matrices, bias
            full((6, 128, 128)), full((1, 128)),                   # fc1 (flatten folded), bias
            full((128, 128)), full((1, 128)),                      # fc2, bias
            full((128, 128)), full((1, 128)),                      # fc3, bias
        ],
        out_specs=pl.BlockSpec((1, 1, 128), lambda i: (i, 0, 0)),
        compiler_params=pltpu.CompilerParams(
            dimension_semantics=("parallel",)),
    )(xph, packed["t1"], packed["b1"], packed["t2"], packed["b2"],
      packed["w1r"], packed["bf1"], packed["w2m"], packed["bf2"],
      packed["w3m"], packed["bf3"])
    return out[:, 0, :10]


# ---------------------------------------------------------------------------
# Plain-JAX reference (same math as the PyTorch module) and init.
# ---------------------------------------------------------------------------
def lenet_reference(x_nchw, params):
    y = lax.conv_general_dilated(x_nchw, params["conv1_w"], (1, 1), "VALID",
                                 dimension_numbers=("NCHW", "OIHW", "NCHW"))
    y = jax.nn.relu(y + params["conv1_b"][None, :, None, None])
    y = lax.reduce_window(y, -jnp.inf, lax.max, (1, 1, 2, 2), (1, 1, 2, 2), "VALID")
    y = lax.conv_general_dilated(y, params["conv2_w"], (1, 1), "VALID",
                                 dimension_numbers=("NCHW", "OIHW", "NCHW"))
    y = jax.nn.relu(y + params["conv2_b"][None, :, None, None])
    y = lax.reduce_window(y, -jnp.inf, lax.max, (1, 1, 2, 2), (1, 1, 2, 2), "VALID")
    y = y.reshape(y.shape[0], -1)                      # NCHW flatten, like view(-1, 576)
    y = jax.nn.relu(y @ params["fc1_w"].T + params["fc1_b"])
    y = jax.nn.relu(y @ params["fc2_w"].T + params["fc2_b"])
    return y @ params["fc3_w"].T + params["fc3_b"]


def init_params(key):
    """Deterministic init; same shapes / Kaiming-uniform-style bounds as PyTorch."""
    ks = jax.random.split(key, 10)

    def u(k, shape, fan_in):
        bound = 1.0 / jnp.sqrt(float(fan_in))
        return jax.random.uniform(k, shape, jnp.float32, -bound, bound)

    return {
        "conv1_w": u(ks[0], (6, 1, 5, 5), 1 * 5 * 5),
        "conv1_b": u(ks[1], (6,), 1 * 5 * 5),
        "conv2_w": u(ks[2], (16, 6, 3, 3), 6 * 3 * 3),
        "conv2_b": u(ks[3], (16,), 6 * 3 * 3),
        "fc1_w": u(ks[4], (120, 576), 576),
        "fc1_b": u(ks[5], (120,), 576),
        "fc2_w": u(ks[6], (84, 120), 120),
        "fc2_b": u(ks[7], (84,), 120),
        "fc3_w": u(ks[8], (10, 84), 84),
        "fc3_b": u(ks[9], (10,), 84),
    }


if __name__ == "__main__":
    key = jax.random.PRNGKey(0)
    pkey, xkey = jax.random.split(key)
    params = init_params(pkey)
    packed = pack_params(params)                      # one-time weight repack

    # LeNet's fc1 (16*6*6 features) implies a 32x32 single-channel input.
    x = jax.random.normal(xkey, (2, 1, 32, 32), jnp.float32)

    out = jax.jit(lenet_forward)(x, packed)
    out = jax.block_until_ready(out)
    assert out.shape == (2, 10) and out.dtype == jnp.float32

    ref = lenet_reference(x, params)
    err = float(jnp.max(jnp.abs(out - ref)))
    assert err < 8e-2, f"kernel/reference mismatch: max abs err = {err}"
    print("KERNEL_OK")
</pallas_src>

<mosaic_0001>
module attributes {stable_mosaic.version = 11 : i64} {
  func.func @_lenet_kernel(%arg0: i32, %arg1: memref<1x4x8x32xbf16, #tpu.memory_space<vmem>>, %arg2: memref<5x32x256xbf16, #tpu.memory_space<vmem>>, %arg3: memref<1x128xf32, #tpu.memory_space<vmem>>, %arg4: memref<3x128x256xbf16, #tpu.memory_space<vmem>>, %arg5: memref<1x128xf32, #tpu.memory_space<vmem>>, %arg6: memref<6x128x128xbf16, #tpu.memory_space<vmem>>, %arg7: memref<1x128xf32, #tpu.memory_space<vmem>>, %arg8: memref<128x128xbf16, #tpu.memory_space<vmem>>, %arg9: memref<1x128xf32, #tpu.memory_space<vmem>>, %arg10: memref<128x128xbf16, #tpu.memory_space<vmem>>, %arg11: memref<1x128xf32, #tpu.memory_space<vmem>>, %arg12: memref<1x1x128xf32, #tpu.memory_space<vmem>>) attributes {dimension_semantics = [#tpu.dimension_semantics<parallel>], iteration_bounds = array<i64: 2>, scalar_prefetch = 0 : i64, scratch_operands = 0 : i64, tpu.core_type = #tpu.core_type<tc>, window_params = [{transform_indices = @transform_0, window_bounds = array<i64: 1, 4, 8, 32>}, {pipeline_mode = #tpu.pipeline_mode<synchronous>, transform_indices = @transform_1, window_bounds = array<i64: 5, 32, 256>}, {pipeline_mode = #tpu.pipeline_mode<synchronous>, transform_indices = @transform_2, window_bounds = array<i64: 1, 128>}, {pipeline_mode = #tpu.pipeline_mode<synchronous>, transform_indices = @transform_3, window_bounds = array<i64: 3, 128, 256>}, {pipeline_mode = #tpu.pipeline_mode<synchronous>, transform_indices = @transform_4, window_bounds = array<i64: 1, 128>}, {pipeline_mode = #tpu.pipeline_mode<synchronous>, transform_indices = @transform_5, window_bounds = array<i64: 6, 128, 128>}, {pipeline_mode = #tpu.pipeline_mode<synchronous>, transform_indices = @transform_6, window_bounds = array<i64: 1, 128>}, {pipeline_mode = #tpu.pipeline_mode<synchronous>, transform_indices = @transform_7, window_bounds = array<i64: 128, 128>}, {pipeline_mode = #tpu.pipeline_mode<synchronous>, transform_indices = @transform_8, window_bounds = array<i64: 1, 128>}, {pipeline_mode = #tpu.pipeline_mode<synchronous>, transform_indices = @transform_9, window_bounds = array<i64: 128, 128>}, {pipeline_mode = #tpu.pipeline_mode<synchronous>, transform_indices = @transform_10, window_bounds = array<i64: 1, 128>}, {transform_indices = @transform_11, window_bounds = array<i64: 1, 1, 128>}]} {
    %c0 = arith.constant 0 : index
    %c0_0 = arith.constant 0 : index
    %c0_1 = arith.constant 0 : index
    %c0_2 = arith.constant 0 : index
    %0 = vector.load %arg1[%c0, %c0_0, %c0_1, %c0_2] : memref<1x4x8x32xbf16, #tpu.memory_space<vmem>>, vector<1x1x7x32xbf16>
    %1 = vector.shape_cast %0 : vector<1x1x7x32xbf16> to vector<7x32xbf16>
    %c0_3 = arith.constant 0 : index
    %c0_4 = arith.constant 0 : index
    %c0_5 = arith.constant 0 : index
    %2 = vector.load %arg2[%c0_3, %c0_4, %c0_5] : memref<5x32x256xbf16, #tpu.memory_space<vmem>>, vector<1x32x256xbf16>
    %3 = vector.shape_cast %2 : vector<1x32x256xbf16> to vector<32x256xbf16>
    %cst = arith.constant dense<0.000000e+00> : vector<7x256xf32>
    %4 = tpu.matmul %1, %3, %cst {dimension_numbers = #tpu.dot_dimension_numbers<[1], [0], [0], [1], [0, 0, 1, 1], [], []>} : vector<7x32xbf16>, vector<32x256xbf16>, vector<7x256xf32> -> vector<7x256xf32>
    %c0_6 = arith.constant 0 : index
    %c1 = arith.constant 1 : index
    %c0_7 = arith.constant 0 : index
    %c0_8 = arith.constant 0 : index
    %5 = vector.load %arg1[%c0_6, %c1, %c0_7, %c0_8] : memref<1x4x8x32xbf16, #tpu.memory_space<vmem>>, vector<1x1x7x32xbf16>
    %6 = vector.shape_cast %5 : vector<1x1x7x32xbf16> to vector<7x32xbf16>
    %c1_9 = arith.constant 1 : index
    %c0_10 = arith.constant 0 : index
    %c0_11 = arith.constant 0 : index
    %7 = vector.load %arg2[%c1_9, %c0_10, %c0_11] : memref<5x32x256xbf16, #tpu.memory_space<vmem>>, vector<1x32x256xbf16>
    %8 = vector.shape_cast %7 : vector<1x32x256xbf16> to vector<32x256xbf16>
    %cst_12 = arith.constant dense<0.000000e+00> : vector<7x256xf32>
    %9 = tpu.matmul %6, %8, %cst_12 {dimension_numbers = #tpu.dot_dimension_numbers<[1], [0], [0], [1], [0, 0, 1, 1], [], []>} : vector<7x32xbf16>, vector<32x256xbf16>, vector<7x256xf32> -> vector<7x256xf32>
    %10 = arith.addf %4, %9 : vector<7x256xf32>
    %c0_13 = arith.constant 0 : index
    %c2 = arith.constant 2 : index
    %c0_14 = arith.constant 0 : index
    %c0_15 = arith.constant 0 : index
    %11 = vector.load %arg1[%c0_13, %c2, %c0_14, %c0_15] : memref<1x4x8x32xbf16, #tpu.memory_space<vmem>>, vector<1x1x7x32xbf16>
    %12 = vector.shape_cast %11 : vector<1x1x7x32xbf16> to vector<7x32xbf16>
    %c2_16 = arith.constant 2 : index
    %c0_17 = arith.constant 0 : index
    %c0_18 = arith.constant 0 : index
    %13 = vector.load %arg2[%c2_16, %c0_17, %c0_18] : memref<5x32x256xbf16, #tpu.memory_space<vmem>>, vector<1x32x256xbf16>
    %14 = vector.shape_cast %13 : vector<1x32x256xbf16> to vector<32x256xbf16>
    %cst_19 = arith.constant dense<0.000000e+00> : vector<7x256xf32>
    %15 = tpu.matmul %12, %14, %cst_19 {dimension_numbers = #tpu.dot_dimension_numbers<[1], [0], [0], [1], [0, 0, 1, 1], [], []>} : vector<7x32xbf16>, vector<32x256xbf16>, vector<7x256xf32> -> vector<7x256xf32>
    %16 = arith.addf %10, %15 : vector<7x256xf32>
    %c0_20 = arith.constant 0 : index
    %c3 = arith.constant 3 : index
    %c0_21 = arith.constant 0 : index
    %c0_22 = arith.constant 0 : index
    %17 = vector.load %arg1[%c0_20, %c3, %c0_21, %c0_22] : memref<1x4x8x32xbf16, #tpu.memory_space<vmem>>, vector<1x1x7x32xbf16>
    %18 = vector.shape_cast %17 : vector<1x1x7x32xbf16> to vector<7x32xbf16>
    %c3_23 = arith.constant 3 : index
    %c0_24 = arith.constant 0 : index
    %c0_25 = arith.constant 0 : index
    %19 = vector.load %arg2[%c3_23, %c0_24, %c0_25] : memref<5x32x256xbf16, #tpu.memory_space<vmem>>, vector<1x32x256xbf16>
    %20 = vector.shape_cast %19 : vector<1x32x256xbf16> to vector<32x256xbf16>
    %cst_26 = arith.constant dense<0.000000e+00> : vector<7x256xf32>
    %21 = tpu.matmul %18, %20, %cst_26 {dimension_numbers = #tpu.dot_dimension_numbers<[1], [0], [0], [1], [0, 0, 1, 1], [], []>} : vector<7x32xbf16>, vector<32x256xbf16>, vector<7x256xf32> -> vector<7x256xf32>
    %22 = arith.addf %16, %21 : vector<7x256xf32>
    %c0_27 = arith.constant 0 : index
    %c0_28 = arith.constant 0 : index
    %c1_29 = arith.constant 1 : index
    %c0_30 = arith.constant 0 : index
    %23 = vector.load %arg1[%c0_27, %c0_28, %c1_29, %c0_30] : memref<1x4x8x32xbf16, #tpu.memory_space<vmem>>, vector<1x1x7x32xbf16>
    %24 = vector.shape_cast %23 : vector<1x1x7x32xbf16> to vector<7x32xbf16>
    %c4 = arith.constant 4 : index
    %c0_31 = arith.constant 0 : index
    %c0_32 = arith.constant 0 : index
    %25 = vector.load %arg2[%c4, %c0_31, %c0_32] : memref<5x32x256xbf16, #tpu.memory_space<vmem>>, vector<1x32x256xbf16>
    %26 = vector.shape_cast %25 : vector<1x32x256xbf16> to vector<32x256xbf16>
    %cst_33 = arith.constant dense<0.000000e+00> : vector<7x256xf32>
    %27 = tpu.matmul %24, %26, %cst_33 {dimension_numbers = #tpu.dot_dimension_numbers<[1], [0], [0], [1], [0, 0, 1, 1], [], []>} : vector<7x32xbf16>, vector<32x256xbf16>, vector<7x256xf32> -> vector<7x256xf32>
    %28 = arith.addf %22, %27 : vector<7x256xf32>
    %c0_34 = arith.constant 0 : index
    %c1_35 = arith.constant 1 : index
    %c0_36 = arith.constant 0 : index
    %c0_37 = arith.constant 0 : index
    %29 = vector.load %arg1[%c0_34, %c1_35, %c0_36, %c0_37] : memref<1x4x8x32xbf16, #tpu.memory_space<vmem>>, vector<1x1x7x32xbf16>
    %30 = vector.shape_cast %29 : vector<1x1x7x32xbf16> to vector<7x32xbf16>
    %c0_38 = arith.constant 0 : index
    %c0_39 = arith.constant 0 : index
    %c0_40 = arith.constant 0 : index
    %31 = vector.load %arg2[%c0_38, %c0_39, %c0_40] : memref<5x32x256xbf16, #tpu.memory_space<vmem>>, vector<1x32x256xbf16>
    %32 = vector.shape_cast %31 : vector<1x32x256xbf16> to vector<32x256xbf16>
    %cst_41 = arith.constant dense<0.000000e+00> : vector<7x256xf32>
    %33 = tpu.matmul %30, %32, %cst_41 {dimension_numbers = #tpu.dot_dimension_numbers<[1], [0], [0], [1], [0, 0, 1, 1], [], []>} : vector<7x32xbf16>, vector<32x256xbf16>, vector<7x256xf32> -> vector<7x256xf32>
    %c0_42 = arith.constant 0 : index
    %c2_43 = arith.constant 2 : index
    %c0_44 = arith.constant 0 : index
    %c0_45 = arith.constant 0 : index
    %34 = vector.load %arg1[%c0_42, %c2_43, %c0_44, %c0_45] : memref<1x4x8x32xbf16, #tpu.memory_space<vmem>>, vector<1x1x7x32xbf16>
    %35 = vector.shape_cast %34 : vector<1x1x7x32xbf16> to vector<7x32xbf16>
    %c1_46 = arith.constant 1 : index
    %c0_47 = arith.constant 0 : index
    %c0_48 = arith.constant 0 : index
    %36 = vector.load %arg2[%c1_46, %c0_47, %c0_48] : memref<5x32x256xbf16, #tpu.memory_space<vmem>>, vector<1x32x256xbf16>
    %37 = vector.shape_cast %36 : vector<1x32x256xbf16> to vector<32x256xbf16>
    %cst_49 = arith.constant dense<0.000000e+00> : vector<7x256xf32>
    %38 = tpu.matmul %35, %37, %cst_49 {dimension_numbers = #tpu.dot_dimension_numbers<[1], [0], [0], [1], [0, 0, 1, 1], [], []>} : vector<7x32xbf16>, vector<32x256xbf16>, vector<7x256xf32> -> vector<7x256xf32>
    %39 = arith.addf %33, %38 : vector<7x256xf32>
    %c0_50 = arith.constant 0 : index
    %c3_51 = arith.constant 3 : index
    %c0_52 = arith.constant 0 : index
    %c0_53 = arith.constant 0 : index
    %40 = vector.load %arg1[%c0_50, %c3_51, %c0_52, %c0_53] : memref<1x4x8x32xbf16, #tpu.memory_space<vmem>>, vector<1x1x7x32xbf16>
    %41 = vector.shape_cast %40 : vector<1x1x7x32xbf16> to vector<7x32xbf16>
    %c2_54 = arith.constant 2 : index
    %c0_55 = arith.constant 0 : index
    %c0_56 = arith.constant 0 : index
    %42 = vector.load %arg2[%c2_54, %c0_55, %c0_56] : memref<5x32x256xbf16, #tpu.memory_space<vmem>>, vector<1x32x256xbf16>
    %43 = vector.shape_cast %42 : vector<1x32x256xbf16> to vector<32x256xbf16>
    %cst_57 = arith.constant dense<0.000000e+00> : vector<7x256xf32>
    %44 = tpu.matmul %41, %43, %cst_57 {dimension_numbers = #tpu.dot_dimension_numbers<[1], [0], [0], [1], [0, 0, 1, 1], [], []>} : vector<7x32xbf16>, vector<32x256xbf16>, vector<7x256xf32> -> vector<7x256xf32>
    %45 = arith.addf %39, %44 : vector<7x256xf32>
    %c0_58 = arith.constant 0 : index
    %c0_59 = arith.constant 0 : index
    %c1_60 = arith.constant 1 : index
    %c0_61 = arith.constant 0 : index
    %46 = vector.load %arg1[%c0_58, %c0_59, %c1_60, %c0_61] : memref<1x4x8x32xbf16, #tpu.memory_space<vmem>>, vector<1x1x7x32xbf16>
    %47 = vector.shape_cast %46 : vector<1x1x7x32xbf16> to vector<7x32xbf16>
    %c3_62 = arith.constant 3 : index
    %c0_63 = arith.constant 0 : index
    %c0_64 = arith.constant 0 : index
    %48 = vector.load %arg2[%c3_62, %c0_63, %c0_64] : memref<5x32x256xbf16, #tpu.memory_space<vmem>>, vector<1x32x256xbf16>
    %49 = vector.shape_cast %48 : vector<1x32x256xbf16> to vector<32x256xbf16>
    %cst_65 = arith.constant dense<0.000000e+00> : vector<7x256xf32>
    %50 = tpu.matmul %47, %49, %cst_65 {dimension_numbers = #tpu.dot_dimension_numbers<[1], [0], [0], [1], [0, 0, 1, 1], [], []>} : vector<7x32xbf16>, vector<32x256xbf16>, vector<7x256xf32> -> vector<7x256xf32>
    %51 = arith.addf %45, %50 : vector<7x256xf32>
    %c0_66 = arith.constant 0 : index
    %c1_67 = arith.constant 1 : index
    %c1_68 = arith.constant 1 : index
    %c0_69 = arith.constant 0 : index
    %52 = vector.load %arg1[%c0_66, %c1_67, %c1_68, %c0_69] : memref<1x4x8x32xbf16, #tpu.memory_space<vmem>>, vector<1x1x7x32xbf16>
    %53 = vector.shape_cast %52 : vector<1x1x7x32xbf16> to vector<7x32xbf16>
    %c4_70 = arith.constant 4 : index
    %c0_71 = arith.constant 0 : index
    %c0_72 = arith.constant 0 : index
    %54 = vector.load %arg2[%c4_70, %c0_71, %c0_72] : memref<5x32x256xbf16, #tpu.memory_space<vmem>>, vector<1x32x256xbf16>
    %55 = vector.shape_cast %54 : vector<1x32x256xbf16> to vector<32x256xbf16>
    %cst_73 = arith.constant dense<0.000000e+00> : vector<7x256xf32>
    %56 = tpu.matmul %53, %55, %cst_73 {dimension_numbers = #tpu.dot_dimension_numbers<[1], [0], [0], [1], [0, 0, 1, 1], [], []>} : vector<7x32xbf16>, vector<32x256xbf16>, vector<7x256xf32> -> vector<7x256xf32>
    %57 = arith.addf %51, %56 : vector<7x256xf32>
    %58 = arith.maximumf %28, %57 : vector<7x256xf32>
    %59 = vector.extract_strided_slice %58 {offsets = [0, 0], sizes = [7, 128], strides = [1, 1]} : vector<7x256xf32> to vector<7x128xf32>
    %60 = vector.extract_strided_slice %58 {offsets = [0, 128], sizes = [7, 128], strides = [1, 1]} : vector<7x256xf32> to vector<7x128xf32>
    %61 = arith.maximumf %59, %60 : vector<7x128xf32>
    %c0_74 = arith.constant 0 : index
    %c0_75 = arith.constant 0 : index
    %62 = vector.load %arg3[%c0_74, %c0_75] : memref<1x128xf32, #tpu.memory_space<vmem>>, vector<1x128xf32>
    %63 = vector.broadcast %62 : vector<1x128xf32> to vector<7x128xf32>
    %64 = arith.addf %61, %63 : vector<7x128xf32>
    %cst_76 = arith.constant 0.000000e+00 : f32
    %65 = vector.broadcast %cst_76 : f32 to vector<7x128xf32>
    %66 = arith.maximumf %64, %65 : vector<7x128xf32>
    %67 = arith.truncf %66 : vector<7x128xf32> to vector<7x128xbf16>
    %c0_77 = arith.constant 0 : index
    %c2_78 = arith.constant 2 : index
    %c0_79 = arith.constant 0 : index
    %c0_80 = arith.constant 0 : index
    %68 = vector.load %arg1[%c0_77, %c2_78, %c0_79, %c0_80] : memref<1x4x8x32xbf16, #tpu.memory_space<vmem>>, vector<1x1x7x32xbf16>
    %69 = vector.shape_cast %68 : vector<1x1x7x32xbf16> to vector<7x32xbf16>
    %c0_81 = arith.constant 0 : index
    %c0_82 = arith.constant 0 : index
    %c0_83 = arith.constant 0 : index
    %70 = vector.load %arg2[%c0_81, %c0_82, %c0_83] : memref<5x32x256xbf16, #tpu.memory_space<vmem>>, vector<1x32x256xbf16>
    %71 = vector.shape_cast %70 : vector<1x32x256xbf16> to vector<32x256xbf16>
    %cst_84 = arith.constant dense<0.000000e+00> : vector<7x256xf32>
    %72 = tpu.matmul %69, %71, %cst_84 {dimension_numbers = #tpu.dot_dimension_numbers<[1], [0], [0], [1], [0, 0, 1, 1], [], []>} : vector<7x32xbf16>, vector<32x256xbf16>, vector<7x256xf32> -> vector<7x256xf32>
    %c0_85 = arith.constant 0 : index
    %c3_86 = arith.constant 3 : index
    %c0_87 = arith.constant 0 : index
    %c0_88 = arith.constant 0 : index
    %73 = vector.load %arg1[%c0_85, %c3_86, %c0_87, %c0_88] : memref<1x4x8x32xbf16, #tpu.memory_space<vmem>>, vector<1x1x7x32xbf16>
    %74 = vector.shape_cast %73 : vector<1x1x7x32xbf16> to vector<7x32xbf16>
    %c1_89 = arith.constant 1 : index
    %c0_90 = arith.constant 0 : index
    %c0_91 = arith.constant 0 : index
    %75 = vector.load %arg2[%c1_89, %c0_90, %c0_91] : memref<5x32x256xbf16, #tpu.memory_space<vmem>>, vector<1x32x256xbf16>
    %76 = vector.shape_cast %75 : vector<1x32x256xbf16> to vector<32x256xbf16>
    %cst_92 = arith.constant dense<0.000000e+00> : vector<7x256xf32>
    %77 = tpu.matmul %74, %76, %cst_92 {dimension_numbers = #tpu.dot_dimension_numbers<[1], [0], [0], [1], [0, 0, 1, 1], [], []>} : vector<7x32xbf16>, vector<32x256xbf16>, vector<7x256xf32> -> vector<7x256xf32>
    %78 = arith.addf %72, %77 : vector<7x256xf32>
    %c0_93 = arith.constant 0 : index
    %c0_94 = arith.constant 0 : index
    %c1_95 = arith.constant 1 : index
    %c0_96 = arith.constant 0 : index
    %79 = vector.load %arg1[%c0_93, %c0_94, %c1_95, %c0_96] : memref<1x4x8x32xbf16, #tpu.memory_space<vmem>>, vector<1x1x7x32xbf16>
    %80 = vector.shape_cast %79 : vector<1x1x7x32xbf16> to vector<7x32xbf16>
    %c2_97 = arith.constant 2 : index
    %c0_98 = arith.constant 0 : index
    %c0_99 = arith.constant 0 : index
    %81 = vector.load %arg2[%c2_97, %c0_98, %c0_99] : memref<5x32x256xbf16, #tpu.memory_space<vmem>>, vector<1x32x256xbf16>
    %82 = vector.shape_cast %81 : vector<1x32x256xbf16> to vector<32x256xbf16>
    %cst_100 = arith.constant dense<0.000000e+00> : vector<7x256xf32>
    %83 = tpu.matmul %80, %82, %cst_100 {dimension_numbers = #tpu.dot_dimension_numbers<[1], [0], [0], [1], [0, 0, 1, 1], [], []>} : vector<7x32xbf16>, vector<32x256xbf16>, vector<7x256xf32> -> vector<7x256xf32>
    %84 = arith.addf %78, %83 : vector<7x256xf32>
    %c0_101 = arith.constant 0 : index
    %c1_102 = arith.constant 1 : index
    %c1_103 = arith.constant 1 : index
    %c0_104 = arith.constant 0 : index
    %85 = vector.load %arg1[%c0_101, %c1_102, %c1_103, %c0_104] : memref<1x4x8x32xbf16, #tpu.memory_space<vmem>>, vector<1x1x7x32xbf16>
    %86 = vector.shape_cast %85 : vector<1x1x7x32xbf16> to vector<7x32xbf16>
    %c3_105 = arith.constant 3 : index
    %c0_106 = arith.constant 0 : index
    %c0_107 = arith.constant 0 : index
    %87 = vector.load %arg2[%c3_105, %c0_106, %c0_107] : memref<5x32x256xbf16, #tpu.memory_space<vmem>>, vector<1x32x256xbf16>
    %88 = vector.shape_cast %87 : vector<1x32x256xbf16> to vector<32x256xbf16>
    %cst_108 = arith.constant dense<0.000000e+00> : vector<7x256xf32>
    %89 = tpu.matmul %86, %88, %cst_108 {dimension_numbers = #tpu.dot_dimension_numbers<[1], [0], [0], [1], [0, 0, 1, 1], [], []>} : vector<7x32xbf16>, vector<32x256xbf16>, vector<7x256xf32> -> vector<7x256xf32>
    %90 = arith.addf %84, %89 : vector<7x256xf32>
    %c0_109 = arith.constant 0 : index
    %c2_110 = arith.constant 2 : index
    %c1_111 = arith.constant 1 : index
    %c0_112 = arith.constant 0 : index
    %91 = vector.load %arg1[%c0_109, %c2_110, %c1_111, %c0_112] : memref<1x4x8x32xbf16, #tpu.memory_space<vmem>>, vector<1x1x7x32xbf16>
    %92 = vector.shape_cast %91 : vector<1x1x7x32xbf16> to vector<7x32xbf16>
    %c4_113 = arith.constant 4 : index
    %c0_114 = arith.constant 0 : index
    %c0_115 = arith.constant 0 : index
    %93 = vector.load %arg2[%c4_113, %c0_114, %c0_115] : memref<5x32x256xbf16, #tpu.memory_space<vmem>>, vector<1x32x256xbf16>
    %94 = vector.shape_cast %93 : vector<1x32x256xbf16> to vector<32x256xbf16>
    %cst_116 = arith.constant dense<0.000000e+00> : vector<7x256xf32>
    %95 = tpu.matmul %92, %94, %cst_116 {dimension_numbers = #tpu.dot_dimension_numbers<[1], [0], [0], [1], [0, 0, 1, 1], [], []>} : vector<7x32xbf16>, vector<32x256xbf16>, vector<7x256xf32> -> vector<7x256xf32>
    %96 = arith.addf %90, %95 : vector<7x256xf32>
    %c0_117 = arith.constant 0 : index
    %c3_118 = arith.constant 3 : index
    %c0_119 = arith.constant 0 : index
    %c0_120 = arith.constant 0 : index
    %97 = vector.load %arg1[%c0_117, %c3_118, %c0_119, %c0_120] : memref<1x4x8x32xbf16, #tpu.memory_space<vmem>>, vector<1x1x7x32xbf16>
    %98 = vector.shape_cast %97 : vector<1x1x7x32xbf16> to vector<7x32xbf16>
    %c0_121 = arith.constant 0 : index
    %c0_122 = arith.constant 0 : index
    %c0_123 = arith.constant 0 : index
    %99 = vector.load %arg2[%c0_121, %c0_122, %c0_123] : memref<5x32x256xbf16, #tpu.memory_space<vmem>>, vector<1x32x256xbf16>
    %100 = vector.shape_cast %99 : vector<1x32x256xbf16> to vector<32x256xbf16>
    %cst_124 = arith.constant dense<0.000000e+00> : vector<7x256xf32>
    %101 = tpu.matmul %98, %100, %cst_124 {dimension_numbers = #tpu.dot_dimension_numbers<[1], [0], [0], [1], [0, 0, 1, 1], [], []>} : vector<7x32xbf16>, vector<32x256xbf16>, vector<7x256xf32> -> vector<7x256xf32>
    %c0_125 = arith.constant 0 : index
    %c0_126 = arith.constant 0 : index
    %c1_127 = arith.constant 1 : index
    %c0_128 = arith.constant 0 : index
    %102 = vector.load %arg1[%c0_125, %c0_126, %c1_127, %c0_128] : memref<1x4x8x32xbf16, #tpu.memory_space<vmem>>, vector<1x1x7x32xbf16>
    %103 = vector.shape_cast %102 : vector<1x1x7x32xbf16> to vector<7x32xbf16>
    %c1_129 = arith.constant 1 : index
    %c0_130 = arith.constant 0 : index
    %c0_131 = arith.constant 0 : index
    %104 = vector.load %arg2[%c1_129, %c0_130, %c0_131] : memref<5x32x256xbf16, #tpu.memory_space<vmem>>, vector<1x32x256xbf16>
    %105 = vector.shape_cast %104 : vector<1x32x256xbf16> to vector<32x256xbf16>
    %cst_132 = arith.constant dense<0.000000e+00> : vector<7x256xf32>
    %106 = tpu.matmul %103, %105, %cst_132 {dimension_numbers = #tpu.dot_dimension_numbers<[1], [0], [0], [1], [0, 0, 1, 1], [], []>} : vector<7x32xbf16>, vector<32x256xbf16>, vector<7x256xf32> -> vector<7x256xf32>
    %107 = arith.addf %101, %106 : vector<7x256xf32>
    %c0_133 = arith.constant 0 : index
    %c1_134 = arith.constant 1 : index
    %c1_135 = arith.constant 1 : index
    %c0_136 = arith.constant 0 : index
    %108 = vector.load %arg1[%c0_133, %c1_134, %c1_135, %c0_136] : memref<1x4x8x32xbf16, #tpu.memory_space<vmem>>, vector<1x1x7x32xbf16>
    %109 = vector.shape_cast %108 : vector<1x1x7x32xbf16> to vector<7x32xbf16>
    %c2_137 = arith.constant 2 : index
    %c0_138 = arith.constant 0 : index
    %c0_139 = arith.constant 0 : index
    %110 = vector.load %arg2[%c2_137, %c0_138, %c0_139] : memref<5x32x256xbf16, #tpu.memory_space<vmem>>, vector<1x32x256xbf16>
    %111 = vector.shape_cast %110 : vector<1x32x256xbf16> to vector<32x256xbf16>
    %cst_140 = arith.constant dense<0.000000e+00> : vector<7x256xf32>
    %112 = tpu.matmul %109, %111, %cst_140 {dimension_numbers = #tpu.dot_dimension_numbers<[1], [0], [0], [1], [0, 0, 1, 1], [], []>} : vector<7x32xbf16>, vector<32x256xbf16>, vector<7x256xf32> -> vector<7x256xf32>
    %113 = arith.addf %107, %112 : vector<7x256xf32>
    %c0_141 = arith.constant 0 : index
    %c2_142 = arith.constant 2 : index
    %c1_143 = arith.constant 1 : index
    %c0_144 = arith.constant 0 : index
    %114 = vector.load %arg1[%c0_141, %c2_142, %c1_143, %c0_144] : memref<1x4x8x32xbf16, #tpu.memory_space<vmem>>, vector<1x1x7x32xbf16>
    %115 = vector.shape_cast %114 : vector<1x1x7x32xbf16> to vector<7x32xbf16>
    %c3_145 = arith.constant 3 : index
    %c0_146 = arith.constant 0 : index
    %c0_147 = arith.constant 0 : index
    %116 = vector.load %arg2[%c3_145, %c0_146, %c0_147] : memref<5x32x256xbf16, #tpu.memory_space<vmem>>, vector<1x32x256xbf16>
    %117 = vector.shape_cast %116 : vector<1x32x256xbf16> to vector<32x256xbf16>
    %cst_148 = arith.constant dense<0.000000e+00> : vector<7x256xf32>
    %118 = tpu.matmul %115, %117, %cst_148 {dimension_numbers = #tpu.dot_dimension_numbers<[1], [0], [0], [1], [0, 0, 1, 1], [], []>} : vector<7x32xbf16>, vector<32x256xbf16>, vector<7x256xf32> -> vector<7x256xf32>
    %119 = arith.addf %113, %118 : vector<7x256xf32>
    %c0_149 = arith.constant 0 : index
    %c3_150 = arith.constant 3 : index
    %c1_151 = arith.constant 1 : index
    %c0_152 = arith.constant 0 : index
    %120 = vector.load %arg1[%c0_149, %c3_150, %c1_151, %c0_152] : memref<1x4x8x32xbf16, #tpu.memory_space<vmem>>, vector<1x1x7x32xbf16>
    %121 = vector.shape_cast %120 : vector<1x1x7x32xbf16> to vector<7x32xbf16>
    %c4_153 = arith.constant 4 : index
    %c0_154 = arith.constant 0 : index
    %c0_155 = arith.constant 0 : index
    %122 = vector.load %arg2[%c4_153, %c0_154, %c0_155] : memref<5x32x256xbf16, #tpu.memory_space<vmem>>, vector<1x32x256xbf16>
    %123 = vector.shape_cast %122 : vector<1x32x256xbf16> to vector<32x256xbf16>
    %cst_156 = arith.constant dense<0.000000e+00> : vector<7x256xf32>
    %124 = tpu.matmul %121, %123, %cst_156 {dimension_numbers = #tpu.dot_dimension_numbers<[1], [0], [0], [1], [0, 0, 1, 1], [], []>} : vector<7x32xbf16>, vector<32x256xbf16>, vector<7x256xf32> -> vector<7x256xf32>
    %125 = arith.addf %119, %124 : vector<7x256xf32>
    %126 = arith.maximumf %96, %125 : vector<7x256xf32>
    %127 = vector.extract_strided_slice %126 {offsets = [0, 0], sizes = [7, 128], strides = [1, 1]} : vector<7x256xf32> to vector<7x128xf32>
    %128 = vector.extract_strided_slice %126 {offsets = [0, 128], sizes = [7, 128], strides = [1, 1]} : vector<7x256xf32> to vector<7x128xf32>
    %129 = arith.maximumf %127, %128 : vector<7x128xf32>
    %c0_157 = arith.constant 0 : index
    %c0_158 = arith.constant 0 : index
    %130 = vector.load %arg3[%c0_157, %c0_158] : memref<1x128xf32, #tpu.memory_space<vmem>>, vector<1x128xf32>
    %131 = vector.broadcast %130 : vector<1x128xf32> to vector<7x128xf32>
    %132 = arith.addf %129, %131 : vector<7x128xf32>
    %cst_159 = arith.constant 0.000000e+00 : f32
    %133 = vector.broadcast %cst_159 : f32 to vector<7x128xf32>
    %134 = arith.maximumf %132, %133 : vector<7x128xf32>
    %135 = arith.truncf %134 : vector<7x128xf32> to vector<7x128xbf16>
    %136 = vector.extract_strided_slice %67 {offsets = [0, 0], sizes = [6, 128], strides = [1, 1]} : vector<7x128xbf16> to vector<6x128xbf16>
    %c0_160 = arith.constant 0 : index
    %c0_161 = arith.constant 0 : index
    %c0_162 = arith.constant 0 : index
    %137 = vector.load %arg4[%c0_160, %c0_161, %c0_162] : memref<3x128x256xbf16, #tpu.memory_space<vmem>>, vector<1x128x256xbf16>
    %138 = vector.shape_cast %137 : vector<1x128x256xbf16> to vector<128x256xbf16>
    %cst_163 = arith.constant dense<0.000000e+00> : vector<6x256xf32>
    %139 = tpu.matmul %136, %138, %cst_163 {dimension_numbers = #tpu.dot_dimension_numbers<[1], [0], [0], [1], [0, 0, 1, 1], [], []>} : vector<6x128xbf16>, vector<128x256xbf16>, vector<6x256xf32> -> vector<6x256xf32>
    %140 = vector.extract_strided_slice %135 {offsets = [0, 0], sizes = [6, 128], strides = [1, 1]} : vector<7x128xbf16> to vector<6x128xbf16>
    %c1_164 = arith.constant 1 : index
    %c0_165 = arith.constant 0 : index
    %c0_166 = arith.constant 0 : index
    %141 = vector.load %arg4[%c1_164, %c0_165, %c0_166] : memref<3x128x256xbf16, #tpu.memory_space<vmem>>, vector<1x128x256xbf16>
    %142 = vector.shape_cast %141 : vector<1x128x256xbf16> to vector<128x256xbf16>
    %cst_167 = arith.constant dense<0.000000e+00> : vector<6x256xf32>
    %143 = tpu.matmul %140, %142, %cst_167 {dimension_numbers = #tpu.dot_dimension_numbers<[1], [0], [0], [1], [0, 0, 1, 1], [], []>} : vector<6x128xbf16>, vector<128x256xbf16>, vector<6x256xf32> -> vector<6x256xf32>
    %144 = arith.addf %139, %143 : vector<6x256xf32>
    %145 = vector.extract_strided_slice %67 {offsets = [1, 0], sizes = [6, 128], strides = [1, 1]} : vector<7x128xbf16> to vector<6x128xbf16>
    %c2_168 = arith.constant 2 : index
    %c0_169 = arith.constant 0 : index
    %c0_170 = arith.constant 0 : index
    %146 = vector.load %arg4[%c2_168, %c0_169, %c0_170] : memref<3x128x256xbf16, #tpu.memory_space<vmem>>, vector<1x128x256xbf16>
    %147 = vector.shape_cast %146 : vector<1x128x256xbf16> to vector<128x256xbf16>
    %cst_171 = arith.constant dense<0.000000e+00> : vector<6x256xf32>
    %148 = tpu.matmul %145, %147, %cst_171 {dimension_numbers = #tpu.dot_dimension_numbers<[1], [0], [0], [1], [0, 0, 1, 1], [], []>} : vector<6x128xbf16>, vector<128x256xbf16>, vector<6x256xf32> -> vector<6x256xf32>
    %149 = arith.addf %144, %148 : vector<6x256xf32>
    %150 = vector.extract_strided_slice %135 {offsets = [0, 0], sizes = [6, 128], strides = [1, 1]} : vector<7x128xbf16> to vector<6x128xbf16>
    %c0_172 = arith.constant 0 : index
    %c0_173 = arith.constant 0 : index
    %c0_174 = arith.constant 0 : index
    %151 = vector.load %arg4[%c0_172, %c0_173, %c0_174] : memref<3x128x256xbf16, #tpu.memory_space<vmem>>, vector<1x128x256xbf16>
    %152 = vector.shape_cast %151 : vector<1x128x256xbf16> to vector<128x256xbf16>
    %cst_175 = arith.constant dense<0.000000e+00> : vector<6x256xf32>
    %153 = tpu.matmul %150, %152, %cst_175 {dimension_numbers = #tpu.dot_dimension_numbers<[1], [0], [0], [1], [0, 0, 1, 1], [], []>} : vector<6x128xbf16>, vector<128x256xbf16>, vector<6x256xf32> -> vector<6x256xf32>
    %154 = vector.extract_strided_slice %67 {offsets = [1, 0], sizes = [6, 128], strides = [1, 1]} : vector<7x128xbf16> to vector<6x128xbf16>
    %c1_176 = arith.constant 1 : index
    %c0_177 = arith.constant 0 : index
    %c0_178 = arith.constant 0 : index
    %155 = vector.load %arg4[%c1_176, %c0_177, %c0_178] : memref<3x128x256xbf16, #tpu.memory_space<vmem>>, vector<1x128x256xbf16>
    %156 = vector.shape_cast %155 : vector<1x128x256xbf16> to vector<128x256xbf16>
    %cst_179 = arith.constant dense<0.000000e+00> : vector<6x256xf32>
    %157 = tpu.matmul %154, %156, %cst_179 {dimension_numbers = #tpu.dot_dimension_numbers<[1], [0], [0], [1], [0, 0, 1, 1], [], []>} : vector<6x128xbf16>, vector<128x256xbf16>, vector<6x256xf32> -> vector<6x256xf32>
    %158 = arith.addf %153, %157 : vector<6x256xf32>
    %159 = vector.extract_strided_slice %135 {offsets = [1, 0], sizes = [6, 128], strides = [1, 1]} : vector<7x128xbf16> to vector<6x128xbf16>
    %c2_180 = arith.constant 2 : index
    %c0_181 = arith.constant 0 : index
    %c0_182 = arith.constant 0 : index
    %160 = vector.load %arg4[%c2_180, %c0_181, %c0_182] : memref<3x128x256xbf16, #tpu.memory_space<vmem>>, vector<1x128x256xbf16>
    %161 = vector.shape_cast %160 : vector<1x128x256xbf16> to vector<128x256xbf16>
    %cst_183 = arith.constant dense<0.000000e+00> : vector<6x256xf32>
    %162 = tpu.matmul %159, %161, %cst_183 {dimension_numbers = #tpu.dot_dimension_numbers<[1], [0], [0], [1], [0, 0, 1, 1], [], []>} : vector<6x128xbf16>, vector<128x256xbf16>, vector<6x256xf32> -> vector<6x256xf32>
    %163 = arith.addf %158, %162 : vector<6x256xf32>
    %164 = arith.maximumf %149, %163 : vector<6x256xf32>
    %165 = vector.extract_strided_slice %164 {offsets = [0, 0], sizes = [6, 128], strides = [1, 1]} : vector<6x256xf32> to vector<6x128xf32>
    %166 = vector.extract_strided_slice %164 {offsets = [0, 128], sizes = [6, 128], strides = [1, 1]} : vector<6x256xf32> to vector<6x128xf32>
    %167 = arith.maximumf %165, %166 : vector<6x128xf32>
    %c0_184 = arith.constant 0 : index
    %c0_185 = arith.constant 0 : index
    %168 = vector.load %arg5[%c0_184, %c0_185] : memref<1x128xf32, #tpu.memory_space<vmem>>, vector<1x128xf32>
    %169 = vector.broadcast %168 : vector<1x128xf32> to vector<6x128xf32>
    %170 = arith.addf %167, %169 : vector<6x128xf32>
    %cst_186 = arith.constant 0.000000e+00 : f32
    %171 = vector.broadcast %cst_186 : f32 to vector<6x128xf32>
    %172 = arith.maximumf %170, %171 : vector<6x128xf32>
    %173 = arith.truncf %172 : vector<6x128xf32> to vector<6x128xbf16>
    %c0_187 = arith.constant 0 : index
    %c0_188 = arith.constant 0 : index
    %174 = vector.load %arg7[%c0_187, %c0_188] : memref<1x128xf32, #tpu.memory_space<vmem>>, vector<1x128xf32>
    %175 = vector.extract_strided_slice %173 {offsets = [0, 0], sizes = [1, 128], strides = [1, 1]} : vector<6x128xbf16> to vector<1x128xbf16>
    %c0_189 = arith.constant 0 : index
    %c0_190 = arith.constant 0 : index
    %c0_191 = arith.constant 0 : index
    %176 = vector.load %arg6[%c0_189, %c0_190, %c0_191] : memref<6x128x128xbf16, #tpu.memory_space<vmem>>, vector<1x128x128xbf16>
    %177 = vector.shape_cast %176 : vector<1x128x128xbf16> to vector<128x128xbf16>
    %cst_192 = arith.constant dense<0.000000e+00> : vector<1x128xf32>
    %178 = tpu.matmul %175, %177, %cst_192 {dimension_numbers = #tpu.dot_dimension_numbers<[1], [0], [0], [1], [0, 0, 1, 1], [], []>} : vector<1x128xbf16>, vector<128x128xbf16>, vector<1x128xf32> -> vector<1x128xf32>
    %179 = arith.addf %174, %178 : vector<1x128xf32>
    %180 = vector.extract_strided_slice %173 {offsets = [1, 0], sizes = [1, 128], strides = [1, 1]} : vector<6x128xbf16> to vector<1x128xbf16>
    %c1_193 = arith.constant 1 : index
    %c0_194 = arith.constant 0 : index
    %c0_195 = arith.constant 0 : index
    %181 = vector.load %arg6[%c1_193, %c0_194, %c0_195] : memref<6x128x128xbf16, #tpu.memory_space<vmem>>, vector<1x128x128xbf16>
    %182 = vector.shape_cast %181 : vector<1x128x128xbf16> to vector<128x128xbf16>
    %cst_196 = arith.constant dense<0.000000e+00> : vector<1x128xf32>
    %183 = tpu.matmul %180, %182, %cst_196 {dimension_numbers = #tpu.dot_dimension_numbers<[1], [0], [0], [1], [0, 0, 1, 1], [], []>} : vector<1x128xbf16>, vector<128x128xbf16>, vector<1x128xf32> -> vector<1x128xf32>
    %184 = arith.addf %179, %183 : vector<1x128xf32>
    %185 = vector.extract_strided_slice %173 {offsets = [2, 0], sizes = [1, 128], strides = [1, 1]} : vector<6x128xbf16> to vector<1x128xbf16>
    %c2_197 = arith.constant 2 : index
    %c0_198 = arith.constant 0 : index
    %c0_199 = arith.constant 0 : index
    %186 = vector.load %arg6[%c2_197, %c0_198, %c0_199] : memref<6x128x128xbf16, #tpu.memory_space<vmem>>, vector<1x128x128xbf16>
    %187 = vector.shape_cast %186 : vector<1x128x128xbf16> to vector<128x128xbf16>
    %cst_200 = arith.constant dense<0.000000e+00> : vector<1x128xf32>
    %188 = tpu.matmul %185, %187, %cst_200 {dimension_numbers = #tpu.dot_dimension_numbers<[1], [0], [0], [1], [0, 0, 1, 1], [], []>} : vector<1x128xbf16>, vector<128x128xbf16>, vector<1x128xf32> -> vector<1x128xf32>
    %189 = arith.addf %184, %188 : vector<1x128xf32>
    %190 = vector.extract_strided_slice %173 {offsets = [3, 0], sizes = [1, 128], strides = [1, 1]} : vector<6x128xbf16> to vector<1x128xbf16>
    %c3_201 = arith.constant 3 : index
    %c0_202 = arith.constant 0 : index
    %c0_203 = arith.constant 0 : index
    %191 = vector.load %arg6[%c3_201, %c0_202, %c0_203] : memref<6x128x128xbf16, #tpu.memory_space<vmem>>, vector<1x128x128xbf16>
    %192 = vector.shape_cast %191 : vector<1x128x128xbf16> to vector<128x128xbf16>
    %cst_204 = arith.constant dense<0.000000e+00> : vector<1x128xf32>
    %193 = tpu.matmul %190, %192, %cst_204 {dimension_numbers = #tpu.dot_dimension_numbers<[1], [0], [0], [1], [0, 0, 1, 1], [], []>} : vector<1x128xbf16>, vector<128x128xbf16>, vector<1x128xf32> -> vector<1x128xf32>
    %194 = arith.addf %189, %193 : vector<1x128xf32>
    %195 = vector.extract_strided_slice %173 {offsets = [4, 0], sizes = [1, 128], strides = [1, 1]} : vector<6x128xbf16> to vector<1x128xbf16>
    %c4_205 = arith.constant 4 : index
    %c0_206 = arith.constant 0 : index
    %c0_207 = arith.constant 0 : index
    %196 = vector.load %arg6[%c4_205, %c0_206, %c0_207] : memref<6x128x128xbf16, #tpu.memory_space<vmem>>, vector<1x128x128xbf16>
    %197 = vector.shape_cast %196 : vector<1x128x128xbf16> to vector<128x128xbf16>
    %cst_208 = arith.constant dense<0.000000e+00> : vector<1x128xf32>
    %198 = tpu.matmul %195, %197, %cst_208 {dimension_numbers = #tpu.dot_dimension_numbers<[1], [0], [0], [1], [0, 0, 1, 1], [], []>} : vector<1x128xbf16>, vector<128x128xbf16>, vector<1x128xf32> -> vector<1x128xf32>
    %199 = arith.addf %194, %198 : vector<1x128xf32>
    %200 = vector.extract_strided_slice %173 {offsets = [5, 0], sizes = [1, 128], strides = [1, 1]} : vector<6x128xbf16> to vector<1x128xbf16>
    %c5 = arith.constant 5 : index
    %c0_209 = arith.constant 0 : index
    %c0_210 = arith.constant 0 : index
    %201 = vector.load %arg6[%c5, %c0_209, %c0_210] : memref<6x128x128xbf16, #tpu.memory_space<vmem>>, vector<1x128x128xbf16>
    %202 = vector.shape_cast %201 : vector<1x128x128xbf16> to vector<128x128xbf16>
    %cst_211 = arith.constant dense<0.000000e+00> : vector<1x128xf32>
    %203 = tpu.matmul %200, %202, %cst_211 {dimension_numbers = #tpu.dot_dimension_numbers<[1], [0], [0], [1], [0, 0, 1, 1], [], []>} : vector<1x128xbf16>, vector<128x128xbf16>, vector<1x128xf32> -> vector<1x128xf32>
    %204 = arith.addf %199, %203 : vector<1x128xf32>
    %cst_212 = arith.constant 0.000000e+00 : f32
    %205 = vector.broadcast %cst_212 : f32 to vector<1x128xf32>
    %206 = arith.maximumf %204, %205 : vector<1x128xf32>
    %207 = arith.truncf %206 : vector<1x128xf32> to vector<1x128xbf16>
    %c0_213 = arith.constant 0 : index
    %c0_214 = arith.constant 0 : index
    %208 = vector.load %arg9[%c0_213, %c0_214] : memref<1x128xf32, #tpu.memory_space<vmem>>, vector<1x128xf32>
    %c0_215 = arith.constant 0 : index
    %c0_216 = arith.constant 0 : index
    %209 = vector.load %arg8[%c0_215, %c0_216] : memref<128x128xbf16, #tpu.memory_space<vmem>>, vector<128x128xbf16>
    %cst_217 = arith.constant dense<0.000000e+00> : vector<1x128xf32>
    %210 = tpu.matmul %207, %209, %cst_217 {dimension_numbers = #tpu.dot_dimension_numbers<[1], [0], [0], [1], [0, 0, 1, 1], [], []>} : vector<1x128xbf16>, vector<128x128xbf16>, vector<1x128xf32> -> vector<1x128xf32>
    %211 = arith.addf %208, %210 : vector<1x128xf32>
    %cst_218 = arith.constant 0.000000e+00 : f32
    %212 = vector.broadcast %cst_218 : f32 to vector<1x128xf32>
    %213 = arith.maximumf %211, %212 : vector<1x128xf32>
    %214 = arith.truncf %213 : vector<1x128xf32> to vector<1x128xbf16>
    %c0_219 = arith.constant 0 : index
    %c0_220 = arith.constant 0 : index
    %215 = vector.load %arg11[%c0_219, %c0_220] : memref<1x128xf32, #tpu.memory_space<vmem>>, vector<1x128xf32>
    %c0_221 = arith.constant 0 : index
    %c0_222 = arith.constant 0 : index
    %216 = vector.load %arg10[%c0_221, %c0_222] : memref<128x128xbf16, #tpu.memory_space<vmem>>, vector<128x128xbf16>
    %cst_223 = arith.constant dense<0.000000e+00> : vector<1x128xf32>
    %217 = tpu.matmul %214, %216, %cst_223 {dimension_numbers = #tpu.dot_dimension_numbers<[1], [0], [0], [1], [0, 0, 1, 1], [], []>} : vector<1x128xbf16>, vector<128x128xbf16>, vector<1x128xf32> -> vector<1x128xf32>
    %218 = arith.addf %215, %217 : vector<1x128xf32>
    %c0_224 = arith.constant 0 : index
    %c0_225 = arith.constant 0 : index
    %c0_226 = arith.constant 0 : index
    %219 = vector.load %arg12[%c0_224, %c0_225, %c0_226] : memref<1x1x128xf32, #tpu.memory_space<vmem>>, vector<1x1x128xf32>
    %220 = vector.shape_cast %219 : vector<1x1x128xf32> to vector<1x128xf32>
    %221 = vector.shape_cast %218 : vector<1x128xf32> to vector<1x1x128xf32>
    tpu.vector_store %arg12[%c0_224, %c0_225, %c0_226], %221 {strides = array<i32>} : memref<1x1x128xf32, #tpu.memory_space<vmem>>, vector<1x1x128xf32>,
    return
  }
  func.func @transform_0(%arg0: i32) -> (i32, i32, i32, i32) {
    %c0_i32 = arith.constant 0 : i32
    %c0_i32_0 = arith.constant 0 : i32
    %c0_i32_1 = arith.constant 0 : i32
    %c0_i32_2 = arith.constant 0 : i32
    return %arg0, %c0_i32, %c0_i32_0, %c0_i32_1 : i32, i32, i32, i32
  }
  func.func @transform_1(%arg0: i32) -> (i32, i32, i32) {
    %c0_i32 = arith.constant 0 : i32
    %c0_i32_0 = arith.constant 0 : i32
    %c0_i32_1 = arith.constant 0 : i32
    %c0_i32_2 = arith.constant 0 : i32
    return %c0_i32, %c0_i32_0, %c0_i32_1 : i32, i32, i32
  }
  func.func @transform_2(%arg0: i32) -> (i32, i32) {
    %c0_i32 = arith.constant 0 : i32
    %c0_i32_0 = arith.constant 0 : i32
    %c0_i32_1 = arith.constant 0 : i32
    return %c0_i32, %c0_i32_0 : i32, i32
  }
  func.func @transform_3(%arg0: i32) -> (i32, i32, i32) {
    %c0_i32 = arith.constant 0 : i32
    %c0_i32_0 = arith.constant 0 : i32
    %c0_i32_1 = arith.constant 0 : i32
    %c0_i32_2 = arith.constant 0 : i32
    return %c0_i32, %c0_i32_0, %c0_i32_1 : i32, i32, i32
  }
  func.func @transform_4(%arg0: i32) -> (i32, i32) {
    %c0_i32 = arith.constant 0 : i32
    %c0_i32_0 = arith.constant 0 : i32
    %c0_i32_1 = arith.constant 0 : i32
    return %c0_i32, %c0_i32_0 : i32, i32
  }
  func.func @transform_5(%arg0: i32) -> (i32, i32, i32) {
    %c0_i32 = arith.constant 0 : i32
    %c0_i32_0 = arith.constant 0 : i32
    %c0_i32_1 = arith.constant 0 : i32
    %c0_i32_2 = arith.constant 0 : i32
    return %c0_i32, %c0_i32_0, %c0_i32_1 : i32, i32, i32
  }
  func.func @transform_6(%arg0: i32) -> (i32, i32) {
    %c0_i32 = arith.constant 0 : i32
    %c0_i32_0 = arith.constant 0 : i32
    %c0_i32_1 = arith.constant 0 : i32
    return %c0_i32, %c0_i32_0 : i32, i32
  }
  func.func @transform_7(%arg0: i32) -> (i32, i32) {
    %c0_i32 = arith.constant 0 : i32
    %c0_i32_0 = arith.constant 0 : i32
    %c0_i32_1 = arith.constant 0 : i32
    return %c0_i32, %c0_i32_0 : i32, i32
  }
  func.func @transform_8(%arg0: i32) -> (i32, i32) {
    %c0_i32 = arith.constant 0 : i32
    %c0_i32_0 = arith.constant 0 : i32
    %c0_i32_1 = arith.constant 0 : i32
    return %c0_i32, %c0_i32_0 : i32, i32
  }
  func.func @transform_9(%arg0: i32) -> (i32, i32) {
    %c0_i32 = arith.constant 0 : i32
    %c0_i32_0 = arith.constant 0 : i32
    %c0_i32_1 = arith.constant 0 : i32
    return %c0_i32, %c0_i32_0 : i32, i32
  }
  func.func @transform_10(%arg0: i32) -> (i32, i32) {
    %c0_i32 = arith.constant 0 : i32
    %c0_i32_0 = arith.constant 0 : i32
    %c0_i32_1 = arith.constant 0 : i32
    return %c0_i32, %c0_i32_0 : i32, i32
  }
  func.func @transform_11(%arg0: i32) -> (i32, i32, i32) {
    %c0_i32 = arith.constant 0 : i32
    %c0_i32_0 = arith.constant 0 : i32
    %c0_i32_1 = arith.constant 0 : i32
    return %arg0, %c0_i32, %c0_i32_0 : i32, i32, i32
  }
}

</mosaic_0001>

<bundles_post_ra>
// kernel: lenet_forward.1
= control target key start
LH: loop header
LB: loop body
LE: loop exit
PB: predicated region body
PF: predicated region fallthrough
CT: control target
= control target key end

     0   :  { %s4735_s0 = inlined_call_operand.vmem [shape: bf16[2,4,8,32], index: 0, kind: input, shape index: {}]   ;;  %s4736_s1 = inlined_call_operand.vmem [shape: bf16[5,32,256], index: 1, kind: input, shape index: {}]   ;;  %s4737_s2 = inlined_call_operand.vmem [shape: f32[1,128], index: 2, kind: input, shape index: {}]   ;;  %s4738_s3 = inlined_call_operand.hbm [shape: bf16[3,128,256], index: 3, kind: input, shape index: {}]   ;;  %s4739_s4 = inlined_call_operand.vmem [shape: f32[1,128], index: 4, kind: input, shape index: {}]   ;;  %s4740_s5 = inlined_call_operand.hbm [shape: bf16[6,128,128], index: 5, kind: input, shape index: {}]   ;;  %s4741_s6 = inlined_call_operand.vmem [shape: f32[1,128], index: 6, kind: input, shape index: {}]   ;;  %s4742_s7 = inlined_call_operand.vmem [shape: bf16[128,128], index: 7, kind: input, shape index: {}]   ;;  %s4743_s8 = inlined_call_operand.vmem [shape: f32[1,128], index: 8, kind: input, shape index: {}]   ;;  %s4744_s9 = inlined_call_operand.hbm [shape: bf16[128,128], index: 9, kind: input, shape index: {}]   ;;  %s4745_s10 = inlined_call_operand.vmem [shape: f32[1,128], index: 10, kind: input, shape index: {}]   ;;  %s4746_s11 = inlined_call_operand.hbm [shape: f32[2,1,128], index: 11, kind: output, shape index: {}]  }
   0x1   :  { %4758 = sst [smem:[#allocation18_spill]] %s4740_s5 }
   0x2   :  { %16 = vsyncpa [#allocation3], 0 }
   0x3   :  { %17 = vsyncpa [#allocation6], 0 }
   0x4   :  { %18 = vsyncpa [#allocation4], 0 }
   0x5   :  { %20 = vsyncpa [#allocation4 + $0x1], 0  ;;  %s4020_s17 = smov 0   ;;  %s4022_s18 = smov 0  }
   0x6   :  { %s4024_s19 = smov 0   ;;  %s4026_s20 = smov 0  }
   0x7 LB: > { %4759 = sst [smem:[#allocation12_spill]] %s3935_s17  ;;  %s4041_s21 = sadd.s32 4294967295, %s3947_s20   ;;  %s3947_s20 = sphi %s4026_s20, %s4783_s20   ;;  %s3943_s19 = sphi %s4024_s19, %s4785_s19   ;;  %s3939_s18 = sphi %s4022_s18, %s4787_s18   ;;  %s3935_s17 = sphi %s4020_s17, %s4786_s17  }
   0x8   : > { %4760 = sst [smem:[#allocation13_spill]] %s3943_s19  ;;  %s3022_s22 = sadd.s32 4294967294, %s3947_s20  }
   0x9   : > { %4761 = sst [smem:[#allocation14_spill]] %s3947_s20  ;;  %s4045_s23 = sadd.s32 1, %s3947_s20  }
   0xa   : > { %4762 = sst [smem:[#allocation15_spill]] %s4045_s23  ;;  %s269_s24 = sadd.s32 1, %s3943_s19 }
   0xb   : > { %s266_s25 = ssub.s32 %s3947_s20, %s4045_s23  ;;  %p279_p0 = scmp.ne.s32.totalorder %s3943_s19, %s3939_s18 }
   0xc   : > { %p267_p1 = scmp.eq.s32.totalorder %s266_s25, 0  ;;  %p280_p2 = scmp.eq.s32.totalorder %s4041_s21, 1 }
   0xd   : > { %p285_p3 = scmp.ne.s32.totalorder %s3939_s18, %s3935_s17  ;;  %p286_p4 = scmp.eq.s32.totalorder %s3022_s22, 1 }
   0xe   : > { %s4056_s26 = scalar_select %p267_p1, %s3943_s19, %s269_s24  }
   0xf   : > { %p4058_p5 = por %p280_p2, %p279_p0  ;;  %p4062_p6 = por %p286_p4, %p285_p3 }
  0x10   : > { %4763 = sst [smem:[#allocation16_spill]] %s4056_s26  ;;  %p3023_p7 = scmp.ge.s32.totalorder %s3947_s20, 1 }
  0x11   : > { %s4764_s27 = scalar_select %p4058_p5, 1, 0 }
  0x12   : > { %s4765_s28 = scalar_select %p4062_p6, 1, 0 }
  0x13   : > { %p293_p8 = scmp.lt.s32.totalorder %s3947_s20, 3  ;;  %p4748_p9 = scmp.eq.s32.totalorder %s4041_s21, 0 }
  0x14   : > { %4766 = sst [smem:[#allocation17_spill]] %s4765_s28  ;;  %s3949_s30 = smov [#allocation5]  }
  0x15   : > { %p4069_p10 = pnand %p3023_p7, %p293_p8  ;;  %s327_s12 = sshll.u32 %s3949_s30, 4  ;;  %s328_s12 = int_to_ptr.vmem [resolvable:$true] %s327_s12 }
  0x16   : > { %s3950_s14 = smov [#allocation2]   ;;  %s4769_s5 = sld [smem:[#allocation18_spill]] }
  0x17   : > { %s4767_s29 = scalar_select %p4069_p10, 1, 0 }
  0x18   : > { %p3560_p11 = pneg %p4069_p10  ;;  %s311_s15 = sshll.u32 %s3950_s14, 4  ;;  %s4081_s15 = int_to_ptr.vmem [resolvable:$true] %s311_s15 }
  0x1a   : > { %p4077_p12 = pnand %p4748_p9, %p3560_p11 }
  0x1c   : > { %s3793_s24 = scalar_lea.hbm %s4769_s5, 6144  ;;  %p4091_p0 = pneg %p4077_p12 }
  0x1d   : > { %p3794_p13 = scmp.ne.s32.totalorder %s4769_s5, %s3793_s24  ;;  %p3800_p3 = scmp.lt.u32.totalorder %s3793_s24, %s4769_s5 }
  0x1f   : > { %p3796_p1 = pnand %p4091_p0, %p3794_p13 }
  0x21   : > { %p3797_p2 = pneg %p3796_p1 }
  0x23   : > { %p3802_p4 = pnand %p3800_p3, %p3797_p2 }
  0x25   : > { %3805 = shalt.err (!%p3802_p4)
}
  0x26   : > { %s3806_s16 = scalar_lea.vmem %s328_s12, 6144  ;;  %p3814_p9 = scmp.lt.s32.totalorder %s328_s12, %s328_s12 }
  0x27   : > { %p3807_p7 = scmp.ne.s32.totalorder %s328_s12, %s3806_s16  ;;  %p3815_p6 = scmp.lt.s32.totalorder %s3806_s16, %s3806_s16 }
  0x29   : > { %p3809_p8 = pnand %p3807_p7, %p4091_p0  ;;  %p3816_p5 = por %p3815_p6, %p3814_p9 }
  0x2b   : > { %p3810_p11 = pneg %p3809_p8 }
  0x2d   : > { %p3817_p10 = pnand %p3816_p5, %p3810_p11 }
  0x2f   : > { %3820 = shalt.err (!%p3817_p10)
}
  0x30   : > { %s4756_s26 = smov 64   ;;  %s4757_s22 = smov 4  }
  0x31   : > { %3566 = dma.hbm_to_vmem [thread:$0]  (!%p4077_p12), %s4769_s5, 6144, %s328_s12, [#allocation6], %s4756_s26, %s4756_s26, %s4757_s22  }
  0x32   : > { %s3821_s23 = scalar_lea.hbm %s4738_s3, 6144 }
  0x33   : > { %p3822_p5 = scmp.ne.s32.totalorder %s4738_s3, %s3821_s23  ;;  %p3828_p10 = scmp.lt.u32.totalorder %s3821_s23, %s4738_s3 }
  0x35   : > { %p3824_p6 = pnand %p3822_p5, %p4091_p0 }
  0x37   : > { %p3825_p9 = pneg %p3824_p6 }
  0x39   : > { %p3830_p13 = pnand %p3828_p10, %p3825_p9 }
  0x3b   : > { %3833 = shalt.err (!%p3830_p13)
}
  0x3c   : > { %s3834_s12 = scalar_lea.vmem %s4081_s15, 6144  ;;  %p3842_p4 = scmp.lt.s32.totalorder %s4081_s15, %s4081_s15 }
  0x3d   : > { %p3835_p1 = scmp.ne.s32.totalorder %s4081_s15, %s3834_s12  ;;  %p3843_p7 = scmp.lt.s32.totalorder %s3834_s12, %s3834_s12 }
  0x3f   : > { %p3837_p2 = pnand %p3835_p1, %p4091_p0  ;;  %p3844_p8 = por %p3843_p7, %p3842_p4 }
  0x41   : > { %p3838_p3 = pneg %p3837_p2 }
  0x43   : > { %p3845_p11 = pnand %p3844_p8, %p3838_p3 }
  0x45   : > { %3848 = shalt.err (!%p3845_p11)
}
  0x46   : > { %s3953_s28 = smov 128   ;;  %s3954_s17 = smov 8  }
  0x47   : > { %3563 = dma.hbm_to_vmem [thread:$0]  (!%p4077_p12), %s4738_s3, 6144, %s4081_s15, [#allocation3], %s3953_s28, %s3953_s28, %s3954_s17  }
  0x48   : > { %s3955_s19 = smov [#allocation7]   ;;  %s3849_s16 = scalar_lea.hbm %s4744_s9, 1024 }
  0x49   : > { %s349_s24 = sshll.u32 %s3955_s19, 4  ;;  %p3850_p5 = scmp.ne.s32.totalorder %s4744_s9, %s3849_s16  ;;  %s350_s24 = int_to_ptr.vmem [resolvable:$true] %s349_s24 }
  0x4a   : > { %p3856_p10 = scmp.lt.u32.totalorder %s3849_s16, %s4744_s9 }
  0x4b   : > { %p3852_p6 = pnand %p3850_p5, %p4091_p0 }
  0x4d   : > { %p3853_p9 = pneg %p3852_p6 }
  0x4f   : > { %p3858_p13 = pnand %p3856_p10, %p3853_p9 }
  0x51   : > { %3861 = shalt.err (!%p3858_p13)
}
  0x52   : > { %s3862_s15 = scalar_lea.vmem %s350_s24, 1024  ;;  %p3870_p4 = scmp.lt.s32.totalorder %s350_s24, %s350_s24 }
  0x53   : > { %p3863_p1 = scmp.ne.s32.totalorder %s350_s24, %s3862_s15  ;;  %p3871_p7 = scmp.lt.s32.totalorder %s3862_s15, %s3862_s15 }
  0x55   : > { %p3865_p2 = pnand %p3863_p1, %p4091_p0  ;;  %p3872_p8 = por %p3871_p7, %p3870_p4 }
  0x57   : > { %p3866_p3 = pneg %p3865_p2 }
  0x59   : > { %p3873_p11 = pnand %p3872_p8, %p3866_p3 }
  0x5b   : > { %3876 = shalt.err (!%p3873_p11)
}
  0x5c   : > { %s4771_s26 = smov 4   ;;  %s4772_s28 = smov 64  }
  0x5d   : > { %3569 = dma.hbm_to_vmem [thread:$0]  (!%p4077_p12), %s4744_s9, 1024, %s350_s24, [#allocation6], %s4772_s28, %s4772_s28, %s4771_s26  }
  0x5e   : > { %p4773_p5 = scmp.ne.s32.totalorder %s4767_s29, 0 }
  0x5f   : > { %p4774_p0 = scmp.eq.s32.totalorder (!%p4773_p5), %s4041_s21, 0 }
  0x60   : > { %376 = sbr.rel (%p4773_p5) target bundleno = 1619 (0x653), region = 64 }
  0x67   : > { %3922 = dma.done.wait (%p4774_p0), [#allocation3], 6144   ;;  %p4775_p6 = pmov %p4774_p0 }
  0x68   : > { %p4776_p9 = pmov %p4774_p0 }
  0x69   : > { %3924 = vsyncadd (%p4775_p6), [#allocation3], 4294961152 }
  0x6a   : > { %3926 = dma.done.wait (%p4776_p9), [#allocation6], 7168   ;;  %p4777_p10 = pmov %p4774_p0 }
  0x6b   : > { %p423_p13 = scmp.lt.s32.totalorder %s4041_s21, 1  ;;  %v3956_v0 = vmov 0   ;;  %v4171_v1 = vld [vmem:[%s4736_s1 + $0x24] ss:$8 sps:$4 sm:$0xff]   ;;  %v4176_v2 = vld [vmem:[%s4736_s1 + $0x20] ss:$8 sps:$4 sm:$0xff]  }
  0x6c   : > { %3928 = vsyncadd (%p4777_p10), [#allocation6], 4294960128  ;;  %497 = vmatprep.mubr.bf16.mxu0 %v3956_v0  ;;  %829 = vmatprep.mubr.bf16.mxu1 %v3956_v0  ;;  %v4183_v3 = vld [vmem:[%s4736_s1 + $0x34] ss:$8 sps:$4 sm:$0xff]   ;;  %v4190_v4 = vld [vmem:[%s4736_s1 + $0x30] ss:$8 sps:$4 sm:$0xff]  }
  0x6d   : > { %s424_s29 = scalar_select %p423_p13, %s4041_s21, 1  ;;  %465 = vmatprep.subr.bf16.mxu0 %v4171_v1  ;;  %797 = vmatprep.subr.bf16.mxu1 %v4171_v1  ;;  %v4202_v5 = vld [vmem:[%s4736_s1 + $0x4] ss:$8 sps:$4 sm:$0xff]   ;;  %vm461_vm0 = vcmask 261120   ;;  %v4213_v8 = vld [vmem:[%s4736_s1] ss:$8 sps:$4 sm:$0xff]  }
  0x6e   : > { %466 = vmatpush1.bf16.msra.mxu0 %v4176_v2  ;;  %798 = vmatpush1.bf16.msra.mxu1 %v4176_v2  ;;  %v4220_v9 = vld [vmem:[%s4736_s1 + $0x14] ss:$8 sps:$4 sm:$0xff]   ;;  %v4230_v10 = vld [vmem:[%s4736_s1 + $0x10] ss:$8 sps:$4 sm:$0xff]   ;;  %v4237_v11 = vld [vmem:[%s4736_s1 + $0x44] ss:$8 sps:$4 sm:$0xff]  }
  0x6f   : > { %s3214_s17 = sshll.u32 %s424_s29, 4  ;;  %467 = vmatprep.subr.bf16.mxu0 %v4183_v3  ;;  %799 = vmatprep.subr.bf16.mxu1 %v4183_v3  ;;  %v4249_v13 = vld [vmem:[%s4736_s1 + $0x40] ss:$8 sps:$4 sm:$0xff]   ;;  %v4254_v14 = vld [vmem:[%s4736_s1 + $0x54] ss:$8 sps:$4 sm:$0xff]   ;;  %vm3958_vm1 = vmmov 0  }
  0x70   : > { %s4195_s15 = scalar_lea.vmem %s4735_s0, %s3214_s17  ;;  %v4259_v15 = vld [vmem:[%s4736_s1 + $0x50] ss:$8 sps:$4 sm:$0xff]   ;;  %v4266_v16 = vld [vmem:[%s4736_s1 + $0x64] ss:$8 sps:$4 sm:$0xff]   ;;  %v4284_v22 = vld [vmem:[%s4736_s1 + $0x60] ss:$8 sps:$4 sm:$0xff]  }
  0x71   : > { %v3034_v6 = vld [vmem:[%s4195_s15 + $0x4] sm:$0xf]  ;;  %v4208_v7 = vld [vmem:[%s4195_s15 + $0x8] sm:$0xf]  ;;  %v429_v12 = vld [vmem:[%s4195_s15] sm:$0xf] }
  0x72   : > { %468 = vmatpush1.bf16.msra.mxu0 %v4190_v4  ;;  %800 = vmatpush1.bf16.msra.mxu1 %v4190_v4  ;;  %v3083_v17 = vcombine.low %v3034_v6, %v3034_v6  ;;  %v3073_v18 = vcombine.low %v429_v12, %v429_v12  ;;  %v4279_v21 = vld [vmem:[%s4195_s15 + $0xc] sm:$0xf]  ;;  %v4289_v23 = vld [vmem:[%s4736_s1 + $0x74] ss:$8 sps:$4 sm:$0xff]   ;;  %v4294_v28 = vld [vmem:[%s4736_s1 + $0x70] ss:$8 sps:$4 sm:$0xff]   ;;  %v3090_v35 = vcombine.low %v4208_v7, %v4208_v7 }
  0x73   : > { %529 = vmatprep.subr.bf16.mxu0 %v4202_v5  ;;  %838 = vmatprep.subr.bf16.mxu1 %v4202_v5  ;;  %v4303_v29 = vld [vmem:[%s4736_s1 + $0x84] ss:$8 sps:$4 sm:$0xff]   ;;  %v4318_v30 = vld [vmem:[%s4736_s1 + $0x80] ss:$8 sps:$4 sm:$0xff]   ;;  %v4323_v32 = vld [vmem:[%s4736_s1 + $0x94] ss:$8 sps:$4 sm:$0xff]   ;;  %v3096_v40 = vcombine.low %v4279_v21, %v4279_v21 }
  0x74   : > { %v971_v19 = vshll.u32 %v3083_v17, 16  ;;  %v727_v20 = vshll.u32 %v3073_v18, 16  ;;  %v969_v24 = vshrl.u32 %v3083_v17, 16  ;;  %v725_v26 = vshrl.u32 %v3073_v18, 16  ;;  %v4328_v33 = vld [vmem:[%s4736_s1 + $0x90] ss:$8 sps:$4 sm:$0xff]  }
  0x75   : > { %3043 = vmatmul.mubr.msk.bf16.vlgmr.msra.gmra.mrb[0].mxu0 %vm461_vm0, %v3034_v6  ;;  %3079 = vmatmul.mubr.msk.bf16.vlgmr.msra.gmra.mrb[0].mxu1 %vm461_vm0, %v4208_v7  ;;  %v1208_v36 = vshll.u32 %v3090_v35, 16  ;;  %v1206_v37 = vshrl.u32 %v3090_v35, 16  ;;  %v1432_v41 = vshll.u32 %v3096_v40, 16  ;;  %v4404_v42 = vld [vmem:[#allocation2 + $0x104] ss:$8 sps:$4 sm:$0xff]   ;;  %v1430_v43 = vshrl.u32 %v3096_v40, 16 }
  0x76   : > { %530 = vmatpush1.bf16.msra.mxu0 %v4213_v8  ;;  %839 = vmatpush1.bf16.msra.mxu1 %v4213_v8  ;;  %v973_v25 = vrot.slane %v971_v19, 1  ;;  %v729_v27 = vrot.slane %v727_v20, 1  ;;  %v4411_v46 = vld [vmem:[#allocation2 + $0x100] ss:$8 sps:$4 sm:$0xff]   ;;  %v4413_v47 = vld [vmem:[#allocation2 + $0x114] ss:$8 sps:$4 sm:$0xff]  }
  0x77   : > { %531 = vmatprep.subr.bf16.mxu0 %v4220_v9  ;;  %840 = vmatprep.subr.bf16.mxu1 %v4220_v9  ;;  %v1210_v38 = vrot.slane %v1208_v36, 1  ;;  %v1434_v44 = vrot.slane %v1432_v41, 1  ;;  %v4418_v48 = vld [vmem:[#allocation2 + $0x110] ss:$8 sps:$4 sm:$0xff]   ;;  %v4422_v49 = vld [vmem:[#allocation2 + $0x124] ss:$8 sps:$4 sm:$0xff]  }
  0x78   : > { %561 = vmatprep.mubr.bf16.mxu0 %v3956_v0  ;;  %870 = vmatprep.mubr.bf16.mxu1 %v3956_v0  ;;  %v730_v31 = vor.u32 %v729_v27, %v725_v26  ;;  %v974_v34 = vor.u32 %v973_v25, %v969_v24  ;;  %v4426_v50 = vld [vmem:[#allocation2 + $0x120] ss:$8 sps:$4 sm:$0xff]   ;;  %v4429_v51 = vld [vmem:[#allocation2 + $0x134] ss:$8 sps:$4 sm:$0xff]   ;;  %v4432_v52 = vld [vmem:[#allocation2 + $0x130] ss:$8 sps:$4 sm:$0xff]  }
  0x79   : > { %v1211_v39 = vor.u32 %v1210_v38, %v1206_v37  ;;  %v1435_v45 = vor.u32 %v1434_v44, %v1430_v43  ;;  %v4436_v53 = vld [vmem:[#allocation2 + $0x144] ss:$8 sps:$4 sm:$0xff]   ;;  %v4438_v54 = vld [vmem:[#allocation2 + $0x140] ss:$8 sps:$4 sm:$0xff]   ;;  %v4442_v55 = vld [vmem:[#allocation2 + $0x154] ss:$8 sps:$4 sm:$0xff]  }
  0x7a   : > { %532 = vmatpush1.bf16.msra.mxu0 %v4230_v10  ;;  %841 = vmatpush1.bf16.msra.mxu1 %v4230_v10  ;;  %v4444_v56 = vld [vmem:[#allocation2 + $0x150] ss:$8 sps:$4 sm:$0xff]   ;;  %v4448_v57 = vld [vmem:[#allocation2 + $0x164] ss:$8 sps:$4 sm:$0xff]   ;;  %v4450_v58 = vld [vmem:[#allocation2 + $0x160] ss:$8 sps:$4 sm:$0xff]  }
  0x7b   : > { %600 = vmatprep.subr.bf16.mxu0 %v4237_v11  ;;  %879 = vmatprep.subr.bf16.mxu1 %v4237_v11  ;;  %v4453_v59 = vld [vmem:[#allocation2 + $0x174] ss:$8 sps:$4 sm:$0xff]   ;;  %v4456_v60 = vld [vmem:[#allocation2 + $0x170] ss:$8 sps:$4 sm:$0xff]   ;;  %v4460_v61 = vld [vmem:[#allocation2 + $0x80] ss:$8 sps:$4 sm:$0xff]  }
  0x7c   : > { %v4462_v62 = vld [vmem:[#allocation2 + $0x84] ss:$8 sps:$4 sm:$0xff]   ;;  %v4464_v63 = vld [vmem:[#allocation2 + $0x94] ss:$8 sps:$4 sm:$0xff]   ;;  %s421_s30 = sand.u32 1, %s3939_s18   ;;  %s3211_s20 = sshll.u32 %s4041_s21, 4 }
  0x7d   : > { %s422_s23 = scalar_lea.vmem [#allocation8], %s421_s30  ;;  %s4693_s14 = scalar_lea.hbm %s4746_s11, %s3211_s20 }
  0x7e   : > { %s2936_s19 = sshll.u32 %s422_s23, 4  ;;  %s2924_s16 = scalar_lea.sflag [#allocation4], %s421_s30  ;;  %s4695_s19 = int_to_ptr.vmem [resolvable:$true] %s2936_s19 }
  0x7f   : > { %s3877_s21 = scalar_lea.vmem %s4695_s19, 16  ;;  %p4778_p1 = scmp.ne.s32.totalorder %s4764_s27, 0 }
  0x80   : > { %p3878_p12 = scmp.ne.s32.totalorder %s4695_s19, %s3877_s21  ;;  %s3959_s12 = smov [#allocation8]  }
  0x81   : > { %3048 = vmatmul.mubr.msk.bf16.vlgmr.msra.gmra.mrb[0].mxu0 %vm461_vm0, %v429_v12  ;;  %3080 = vmatmul.mubr.msk.bf16.vlgmr.msra.gmra.mrb[0].mxu1 %vm461_vm0, %v3034_v6  ;;  %v4483_v6 = vld [vmem:[#allocation2 + $0xc4] ss:$8 sps:$4 sm:$0xff]   ;;  %v4502_v12 = vld [vmem:[#allocation2 + $0xf4] ss:$8 sps:$4 sm:$0xff]   ;;  %s3881_s26 = sshll.u32 %s3959_s12, 4  ;;  %s3882_s26 = int_to_ptr.vmem [resolvable:$false] %s3881_s26 }
  0x82   : > { %601 = vmatpush1.bf16.msra.mxu0 %v4249_v13  ;;  %880 = vmatpush1.bf16.msra.mxu1 %v4249_v13  ;;  %p3879_p2 = pnand %p3878_p12, %p4778_p1  ;;  %s3883_s28 = scalar_lea.vmem %s3882_s26, 32 }
  0x83   : > { %602 = vmatprep.subr.bf16.mxu0 %v4254_v14  ;;  %881 = vmatprep.subr.bf16.mxu1 %v4254_v14  ;;  %p3884_p4 = scmp.lt.s32.totalorder %s4695_s19, %s3882_s26  ;;  %p3885_p7 = scmp.lt.s32.totalorder %s3883_s28, %s3877_s21 }
  0x84   : > { %632 = vmatprep.mubr.bf16.mxu0 %v3956_v0  ;;  %911 = vmatprep.mubr.bf16.mxu1 %v3956_v0  ;;  %p3880_p3 = pneg %p3879_p2 }
  0x85   : > { %p3886_p8 = por %p3885_p7, %p3884_p4 }
  0x86   : > { %603 = vmatpush1.bf16.msra.mxu0 %v4259_v15  ;;  %882 = vmatpush1.bf16.msra.mxu1 %v4259_v15 }
  0x87   : > { %673 = vmatprep.subr.bf16.mxu0 %v4266_v16  ;;  %922 = vmatprep.subr.bf16.mxu1 %v4266_v16  ;;  %p3887_p11 = pnand %p3886_p8, %p3880_p3 }
  0x8d   : > { %3058 = vmatmul.mubr.msk.bf16.vlgmr.msra.gmra.mrb[0].mxu0 %vm461_vm0, %v4208_v7  ;;  %3081 = vmatmul.mubr.msk.bf16.vlgmr.msra.gmra.mrb[0].mxu1 %vm461_vm0, %v4279_v21 }
  0x8e   : > { %674 = vmatpush1.bf16.msra.mxu0 %v4284_v22  ;;  %923 = vmatpush1.bf16.msra.mxu1 %v4284_v22 }
  0x8f   : > { %675 = vmatprep.subr.bf16.mxu0 %v4289_v23  ;;  %924 = vmatprep.subr.bf16.mxu1 %v4289_v23 }
  0x90   : > { %705 = vmatprep.mubr.bf16.mxu0 %v3956_v0  ;;  %954 = vmatprep.mubr.bf16.mxu1 %v3956_v0 }
  0x92   : > { %676 = vmatpush1.bf16.msra.mxu0 %v4294_v28  ;;  %925 = vmatpush1.bf16.msra.mxu1 %v4294_v28 }
  0x93   : > { %754 = vmatprep.subr.bf16.mxu0 %v4303_v29  ;;  %978 = vmatprep.subr.bf16.mxu1 %v4303_v29 }
  0x99   : > { %3068 = vmatmul.mubr.msk.bf16.vlgmr.msra.gmra.mrb[0].mxu0 %vm461_vm0, %v4279_v21  ;;  %3082 = vmatmul.mubr.msk.bf16.vlgmr.msra.gmra.mrb[0].mxu1 %vm461_vm0, %v730_v31 }
  0x9a   : > { %755 = vmatpush1.bf16.msra.mxu0 %v4318_v30  ;;  %979 = vmatpush1.bf16.msra.mxu1 %v4318_v30 }
  0x9b   : > { %756 = vmatprep.subr.bf16.mxu0 %v4323_v32  ;;  %980 = vmatprep.subr.bf16.mxu1 %v4323_v32 }
  0x9c   : > { %786 = vmatprep.mubr.bf16.mxu0 %v3956_v0  ;;  %1010 = vmatprep.mubr.bf16.mxu1 %v3956_v0 }
  0x9e   : > { %757 = vmatpush1.bf16.msra.mxu0 %v4328_v33  ;;  %981 = vmatpush1.bf16.msra.mxu1 %v4328_v33 }
  0x9f   : > { %1034 = vmatprep.subr.bf16.mxu0 %v4171_v1  ;;  %1258 = vmatprep.subr.bf16.mxu1 %v4171_v1  ;;  %v4468_v1 = vld [vmem:[#allocation2 + $0x90] ss:$8 sps:$4 sm:$0xff]  }
  0xa5   : > { %3078 = vmatmul.mubr.msk.bf16.vlgmr.msra.gmra.mrb[0].mxu0 %vm461_vm0, %v730_v31  ;;  %3084 = vmatmul.mubr.msk.bf16.vlgmr.msra.gmra.mrb[0].mxu1 %vm461_vm0, %v974_v34 }
  0xa6   : > { %1035 = vmatpush1.bf16.msra.mxu0 %v4176_v2  ;;  %1259 = vmatpush1.bf16.msra.mxu1 %v4176_v2  ;;  %v4471_v2 = vld [vmem:[#allocation2 + $0xa4] ss:$8 sps:$4 sm:$0xff]  }
  0xa7   : > { %1036 = vmatprep.subr.bf16.mxu0 %v4183_v3  ;;  %1260 = vmatprep.subr.bf16.mxu1 %v4183_v3  ;;  %v4474_v3 = vld [vmem:[#allocation2 + $0xa0] ss:$8 sps:$4 sm:$0xff]  }
  0xa8   : > { %1066 = vmatprep.mubr.bf16.mxu0 %v3956_v0  ;;  %1290 = vmatprep.mubr.bf16.mxu1 %v3956_v0 }
  0xaa   : > { %1037 = vmatpush1.bf16.msra.mxu0 %v4190_v4  ;;  %1261 = vmatpush1.bf16.msra.mxu1 %v4190_v4  ;;  %v4477_v4 = vld [vmem:[#allocation2 + $0xb4] ss:$8 sps:$4 sm:$0xff]  }
  0xab   : > { %1075 = vmatprep.subr.bf16.mxu0 %v4202_v5  ;;  %1299 = vmatprep.subr.bf16.mxu1 %v4202_v5  ;;  %v4480_v5 = vld [vmem:[#allocation2 + $0xb0] ss:$8 sps:$4 sm:$0xff]  }
  0xad   : > { %3086 = vmatmul.mubr.msk.bf16.vlgmr.msra.gmra.mrb[4].mxu0 %vm461_vm0, %v4279_v21  ;;  %3092 = vmatmul.mubr.msk.bf16.vlgmr.msra.gmra.mrb[4].mxu1 %vm461_vm0, %v730_v31 }
  0xae   : > { %1076 = vmatpush1.bf16.msra.mxu0 %v4213_v8  ;;  %1300 = vmatpush1.bf16.msra.mxu1 %v4213_v8  ;;  %v4489_v8 = vld [vmem:[#allocation2 + $0xd4] ss:$8 sps:$4 sm:$0xff]  }
  0xaf   : > { %1077 = vmatprep.subr.bf16.mxu0 %v4220_v9  ;;  %1301 = vmatprep.subr.bf16.mxu1 %v4220_v9  ;;  %v4492_v9 = vld [vmem:[#allocation2 + $0xd0] ss:$8 sps:$4 sm:$0xff]  }
  0xb0   : > { %1107 = vmatprep.mubr.bf16.mxu0 %v3956_v0  ;;  %1331 = vmatprep.mubr.bf16.mxu1 %v3956_v0 }
  0xb2   : > { %1078 = vmatpush1.bf16.msra.mxu0 %v4230_v10  ;;  %1302 = vmatpush1.bf16.msra.mxu1 %v4230_v10  ;;  %v4496_v10 = vld [vmem:[#allocation2 + $0xe4] ss:$8 sps:$4 sm:$0xff]  }
  0xb3   : > { %1116 = vmatprep.subr.bf16.mxu0 %v4237_v11  ;;  %1340 = vmatprep.subr.bf16.mxu1 %v4237_v11  ;;  %v4498_v11 = vld [vmem:[#allocation2 + $0xe0] ss:$8 sps:$4 sm:$0xff]  }
  0xb9   : > { %3087 = vmatmul.mubr.msk.bf16.vlgmr.msra.gmra.mrb[4].mxu0 %vm461_vm0, %v4208_v7  ;;  %3093 = vmatmul.mubr.msk.bf16.vlgmr.msra.gmra.mrb[4].mxu1 %vm461_vm0, %v4279_v21  ;;  %v4486_v7 = vld [vmem:[#allocation2 + $0xc0] ss:$8 sps:$4 sm:$0xff]  }
  0xba   : > { %1117 = vmatpush1.bf16.msra.mxu0 %v4249_v13  ;;  %1341 = vmatpush1.bf16.msra.mxu1 %v4249_v13  ;;  %v4504_v13 = vld [vmem:[#allocation2 + $0xf0] ss:$8 sps:$4 sm:$0xff]  }
  0xbb   : > { %1118 = vmatprep.subr.bf16.mxu0 %v4254_v14  ;;  %1342 = vmatprep.subr.bf16.mxu1 %v4254_v14  ;;  %v4508_v14 = vld [vmem:[#allocation2 + $0x4] ss:$8 sps:$4 sm:$0xff]  }
  0xbc   : > { %1148 = vmatprep.mubr.bf16.mxu0 %v3956_v0  ;;  %1372 = vmatprep.mubr.bf16.mxu1 %v3956_v0 }
  0xbe   : > { %1119 = vmatpush1.bf16.msra.mxu0 %v4259_v15  ;;  %1343 = vmatpush1.bf16.msra.mxu1 %v4259_v15 }
  0xbf   : > { %1159 = vmatprep.subr.bf16.mxu0 %v4266_v16  ;;  %1383 = vmatprep.subr.bf16.mxu1 %v4266_v16 }
  0xc5   : > { %3088 = vmatmul.mubr.msk.bf16.vlgmr.msra.gmra.mrb[4].mxu0 %vm461_vm0, %v730_v31  ;;  %3094 = vmatmul.mubr.msk.bf16.vlgmr.msra.gmra.mrb[4].mxu1 %vm461_vm0, %v974_v34 }
  0xc6   : > { %1160 = vmatpush1.bf16.msra.mxu0 %v4284_v22  ;;  %1384 = vmatpush1.bf16.msra.mxu1 %v4284_v22 }
  0xc7   : > { %1161 = vmatprep.subr.bf16.mxu0 %v4289_v23  ;;  %1385 = vmatprep.subr.bf16.mxu1 %v4289_v23  ;;  %v3085_v23 = vld [vmem:[%s4737_s2] ss:$0 sm:$0xff] }
  0xc8   : > { %1191 = vmatprep.mubr.bf16.mxu0 %v3956_v0  ;;  %1415 = vmatprep.mubr.bf16.mxu1 %v3956_v0 }
  0xca   : > { %1162 = vmatpush1.bf16.msra.mxu0 %v4294_v28  ;;  %1386 = vmatpush1.bf16.msra.mxu1 %v4294_v28 }
  0xcb   : > { %1215 = vmatprep.subr.bf16.mxu0 %v4303_v29  ;;  %1439 = vmatprep.subr.bf16.mxu1 %v4303_v29 }
  0xd1   : > { %3089 = vmatmul.mubr.msk.bf16.vlgmr.msra.gmra.mrb[4].mxu0 %vm461_vm0, %v974_v34  ;;  %3095 = vmatmul.mubr.msk.bf16.vlgmr.msra.gmra.mrb[4].mxu1 %vm461_vm0, %v1211_v39 }
  0xd2   : > { %1216 = vmatpush1.bf16.msra.mxu0 %v4318_v30  ;;  %1440 = vmatpush1.bf16.msra.mxu1 %v4318_v30 }
  0xd3   : > { %1217 = vmatprep.subr.bf16.mxu0 %v4323_v32  ;;  %1441 = vmatprep.subr.bf16.mxu1 %v4323_v32 }
  0xd4   : > { %1247 = vmatprep.mubr.bf16.mxu0 %v3956_v0  ;;  %1471 = vmatprep.mubr.bf16.mxu1 %v3956_v0 }
  0xd6   : > { %1218 = vmatpush1.bf16.msra.mxu0 %v4328_v33  ;;  %1442 = vmatpush1.bf16.msra.mxu1 %v4328_v33 }
  0xd7   : > { %1868 = vmatprep.subr.bf16.mxu0 %v4404_v42  ;;  %1601 = vmatprep.subr.bf16.mxu1 %v4462_v62 }
  0xdd   : > { %3091 = vmatmul.mubr.msk.bf16.vlgmr.msra.gmra.mrb[4].mxu0 %vm461_vm0, %v1211_v39  ;;  %3097 = vmatmul.mubr.msk.bf16.vlgmr.msra.gmra.mrb[4].mxu1 %vm461_vm0, %v1435_v45 }
  0xde   : > { %1869 = vmatpush1.bf16.msra.mxu0 %v4411_v46  ;;  %1900 = vmatprep.mubr.bf16.mxu0 %v3956_v0 }
  0xdf   : > { %1870 = vmatprep.subr.bf16.mxu0 %v4413_v47  ;;  %1633 = vmatprep.mubr.bf16.mxu1 %v3956_v0 }
  0xe0   : > { %1602 = vmatpush1.bf16.msra.mxu1 %v4460_v61 }
  0xe1   : > { %1603 = vmatprep.subr.bf16.mxu1 %v4464_v63 }
  0xe2   : > { %1871 = vmatpush1.bf16.msra.mxu0 %v4418_v48 }
  0xe3   : > { %1872 = vmatprep.subr.bf16.mxu0 %v4422_v49 }
  0xe4   : > { %1604 = vmatpush1.bf16.msra.mxu1 %v4468_v1 }
  0xe5   : > { %1605 = vmatprep.subr.bf16.mxu1 %v4471_v2 }
  0xe6   : > { %1873 = vmatpush1.bf16.msra.mxu0 %v4426_v50 }
  0xe7   : > { %1874 = vmatprep.subr.bf16.mxu0 %v4429_v51 }
  0xe8   : > { %1606 = vmatpush1.bf16.msra.mxu1 %v4474_v3 }
  0xe9   : > { %1607 = vmatprep.subr.bf16.mxu1 %v4477_v4 }
  0xea   : > { %1875 = vmatpush1.bf16.msra.mxu0 %v4432_v52 }
  0xeb   : > { %1876 = vmatprep.subr.bf16.mxu0 %v4436_v53 }
  0xec   : > { %1608 = vmatpush1.bf16.msra.mxu1 %v4480_v5 }
  0xed   : > { %1609 = vmatprep.subr.bf16.mxu1 %v4483_v6 }
  0xee   : > { %1877 = vmatpush1.bf16.msra.mxu0 %v4438_v54 }
  0xef   : > { %1878 = vmatprep.subr.bf16.mxu0 %v4442_v55 }
  0xf0   : > { %1610 = vmatpush1.bf16.msra.mxu1 %v4486_v7 }
  0xf1   : > { %1611 = vmatprep.subr.bf16.mxu1 %v4489_v8 }
  0xf2   : > { %1879 = vmatpush1.bf16.msra.mxu0 %v4444_v56 }
  0xf3   : > { %1880 = vmatprep.subr.bf16.mxu0 %v4448_v57 }
  0xf4   : > { %1612 = vmatpush1.bf16.msra.mxu1 %v4492_v9 }
  0xf5   : > { %1613 = vmatprep.subr.bf16.mxu1 %v4496_v10 }
  0xf6   : > { %1881 = vmatpush1.bf16.msra.mxu0 %v4450_v58 }
  0xf7   : > { %1882 = vmatprep.subr.bf16.mxu0 %v4453_v59 }
  0xf8   : > { %1614 = vmatpush1.bf16.msra.mxu1 %v4498_v11 }
  0xf9   : > { %1615 = vmatprep.subr.bf16.mxu1 %v4502_v12 }
  0xfa   : > { %1883 = vmatpush1.bf16.msra.mxu0 %v4456_v60 }
  0xfc   : > { %1616 = vmatpush1.bf16.msra.mxu1 %v4504_v13 }
  0xfd   : > { %1722 = vmatprep.subr.bf16.mxu1 %v4508_v14 }
 0x178   : > { %v788_v15 = vpop.f32.mrb[0].mxu0  ;;  %v1012_v16 = vpop.f32.mrb[0].mxu1 }
 0x179   : > { %v1021_v17 = vmax.f32 %v788_v15, %v1012_v16  ;;  %v790_v18 = vpop.f32.mrb[1].mxu0  ;;  %v1014_v19 = vpop.f32.mrb[1].mxu1 }
 0x17a   : > { %v1022_v20 = vmax.f32 %v790_v18, %v1014_v19  ;;  %v792_v21 = vpop.f32.mrb[2].mxu0  ;;  %v1016_v22 = vpop.f32.mrb[2].mxu1  ;;  %v3710_v19 = vld [vmem:[#allocation2 + $0x14] ss:$8 sps:$4 sm:$0xff]  }
 0x17b   : > { %v793_v24 = vpop.f32.mrb[3].mxu0  ;;  %v1017_v25 = vpop.f32.mrb[3].mxu1  ;;  %v3713_v21 = vld [vmem:[#allocation2 + $0x24] ss:$8 sps:$4 sm:$0xff]   ;;  %v3711_v22 = vld [vmem:[#allocation2 + $0x20] ss:$8 sps:$4 sm:$0xff]  }
 0x17c   : > { %v1023_v26 = vmax.f32 %v1021_v17, %v1022_v20  ;;  %v3705_v17 = vld [vmem:[#allocation2] ss:$8 sps:$4 sm:$0xff]   ;;  %v3708_v20 = vld [vmem:[#allocation2 + $0x10] ss:$8 sps:$4 sm:$0xff]   ;;  %v3716_v24 = vld [vmem:[#allocation2 + $0x34] ss:$8 sps:$4 sm:$0xff]  }
 0x17d   : > { %v3714_v25 = vld [vmem:[#allocation2 + $0x30] ss:$8 sps:$4 sm:$0xff]  }
 0x17e   : > { %v1031_v27 = vadd.f32 %v3085_v23, %v1023_v26  ;;  %v3717_v26 = vld [vmem:[#allocation2 + $0x40] ss:$8 sps:$4 sm:$0xff]  }
 0x180   : > { %v1032_v28 = vmax.f32 %v1031_v27, 0.0  ;;  %v3722_v27 = vld [vmem:[#allocation2 + $0x54] ss:$8 sps:$4 sm:$0xff]  }
 0x182   : > { %v1033_v29 = vpack.c.bf16 %v1032_v28, %v1032_v28  ;;  %v3720_v28 = vld [vmem:[#allocation2 + $0x50] ss:$8 sps:$4 sm:$0xff]  }
 0x184   : > { %v1783_v30 = vshll.u32 %v1033_v29, 16  ;;  %v1781_v31 = vshrl.u32 %v1033_v29, 16 }
 0x186   : > { %v1785_v32 = vrot.slane %v1783_v30, 1  ;;  %v3725_v30 = vld [vmem:[#allocation2 + $0x64] ss:$8 sps:$4 sm:$0xff]  }
 0x188   : > { %v4514_v33 = vor.u32 %v1785_v32, %v1781_v31  ;;  %v3723_v31 = vld [vmem:[#allocation2 + $0x60] ss:$8 sps:$4 sm:$0xff]   ;;  %v3728_v32 = vld [vmem:[#allocation2 + $0x74] ss:$8 sps:$4 sm:$0xff]  }
 0x18a   : > { %1901 = vmatmul.mubr.bf16.vlgmr.msra.gmra.mrb[8].mxu0 %v4514_v33 }
 0x1b0   : > { %v1249_v34 = vpop.f32.mrb[4].mxu0  ;;  %v1473_v35 = vpop.f32.mrb[4].mxu1 }
 0x1b1   : > { %v1482_v36 = vmax.f32 %v1249_v34, %v1473_v35  ;;  %v1251_v37 = vpop.f32.mrb[5].mxu0  ;;  %v1475_v38 = vpop.f32.mrb[5].mxu1  ;;  %v3726_v34 = vld [vmem:[#allocation2 + $0x70] ss:$8 sps:$4 sm:$0xff]  }
 0x1b2   : > { %v1483_v39 = vmax.f32 %v1251_v37, %v1475_v38  ;;  %v1253_v40 = vpop.f32.mrb[6].mxu0  ;;  %v1477_v41 = vpop.f32.mrb[6].mxu1  ;;  %v3739_v35 = vld [vmem:[#allocation5 + $0x50] sm:$0xff]   ;;  %v3741_v37 = vld [vmem:[#allocation5 + $0x60] sm:$0xff]   ;;  %v3742_v38 = vld [vmem:[#allocation5 + $0x68] sm:$0xff]  }
 0x1b3   : > { %v1254_v43 = vpop.f32.mrb[7].mxu0  ;;  %v1478_v44 = vpop.f32.mrb[7].mxu1  ;;  %v3744_v40 = vld [vmem:[#allocation5 + $0x78] sm:$0xff]   ;;  %v3745_v41 = vld [vmem:[#allocation5 + $0x80] sm:$0xff]  }
 0x1b4   : > { %v1484_v45 = vmax.f32 %v1482_v36, %v1483_v39  ;;  %v3740_v36 = vld [vmem:[#allocation5 + $0x58] sm:$0xff]   ;;  %v3743_v39 = vld [vmem:[#allocation5 + $0x70] sm:$0xff]   ;;  %v3777_v44 = vld [vmem:[%s4742_s7] sm:$0xff]  }
 0x1b6   : > { %v1485_v15 = vadd.f32 %v3085_v23, %v1484_v45  ;;  %v3719_v23 = vld [vmem:[#allocation2 + $0x44] ss:$8 sps:$4 sm:$0xff]  }
 0x1b7   : > { %v3746_v45 = vld [vmem:[#allocation5 + $0x88] sm:$0xff]  }
 0x1b8   : > { %v1486_v16 = vmax.f32 %v1485_v15, 0.0  ;;  %v3778_v15 = vld [vmem:[%s4742_s7 + $0x8] sm:$0xff]  }
 0x1ba   : > { %v4517_v18 = vpack.c.bf16 %v1486_v16, %v1486_v16  ;;  %v3747_v16 = vld [vmem:[#allocation5 + $0x90] sm:$0xff]  }
 0x1bc   : > { %1634 = vmatmul.mubr.bf16.vlgmr.msra.gmra.mrb[8].mxu1 %v4517_v18 }
 0x1bd   : > { %1723 = vmatpush1.bf16.msra.mxu1 %v3705_v17  ;;  %1754 = vmatprep.mubr.bf16.mxu1 %v3956_v0 }
 0x1be   : > { %1724 = vmatprep.subr.bf16.mxu1 %v3710_v19 }
 0x1c1   : > { %1725 = vmatpush1.bf16.msra.mxu1 %v3708_v20 }
 0x1c2   : > { %1726 = vmatprep.subr.bf16.mxu1 %v3713_v21 }
 0x1c5   : > { %1727 = vmatpush1.bf16.msra.mxu1 %v3711_v22 }
 0x1c6   : > { %1728 = vmatprep.subr.bf16.mxu1 %v3716_v24 }
 0x1c9   : > { %1729 = vmatpush1.bf16.msra.mxu1 %v3714_v25 }
 0x1ca   : > { %1730 = vmatprep.subr.bf16.mxu1 %v3719_v23 }
 0x1cd   : > { %1731 = vmatpush1.bf16.msra.mxu1 %v3717_v26 }
 0x1ce   : > { %1732 = vmatprep.subr.bf16.mxu1 %v3722_v27 }
 0x1d1   : > { %1733 = vmatpush1.bf16.msra.mxu1 %v3720_v28 }
 0x1d2   : > { %1734 = vmatprep.subr.bf16.mxu1 %v3725_v30 }
 0x1d5   : > { %1735 = vmatpush1.bf16.msra.mxu1 %v3723_v31 }
 0x1d6   : > { %1736 = vmatprep.subr.bf16.mxu1 %v3728_v32 }
 0x1d9   : > { %1737 = vmatpush1.bf16.msra.mxu1 %v3726_v34 }
 0x1da   : > { %1911 = vmatprep.subr.bf16.mxu1 %v4462_v62 }
 0x1dc   : > { %1755 = vmatmul.mubr.bf16.vlgmr.msra.gmra.mrb[8].mxu1 %v1033_v29 }
 0x1dd   : > { %1912 = vmatpush1.bf16.msra.mxu1 %v4460_v61  ;;  %1943 = vmatprep.mubr.bf16.mxu1 %v3956_v0 }
 0x1de   : > { %1913 = vmatprep.subr.bf16.mxu1 %v4464_v63 }
 0x1e1   : > { %1914 = vmatpush1.bf16.msra.mxu1 %v4468_v1 }
 0x1e2   : > { %1915 = vmatprep.subr.bf16.mxu1 %v4471_v2 }
 0x1e5   : > { %1916 = vmatpush1.bf16.msra.mxu1 %v4474_v3 }
 0x1e6   : > { %1917 = vmatprep.subr.bf16.mxu1 %v4477_v4 }
 0x1e9   : > { %1918 = vmatpush1.bf16.msra.mxu1 %v4480_v5 }
 0x1ea   : > { %1919 = vmatprep.subr.bf16.mxu1 %v4483_v6 }
 0x1ed   : > { %1920 = vmatpush1.bf16.msra.mxu1 %v4486_v7 }
 0x1ee   : > { %1921 = vmatprep.subr.bf16.mxu1 %v4489_v8 }
 0x1f1   : > { %1922 = vmatpush1.bf16.msra.mxu1 %v4492_v9  ;;  %v3146_v9 = vld [vmem:[%s4739_s4] ss:$0 sm:$0xff] }
 0x1f2   : > { %1923 = vmatprep.subr.bf16.mxu1 %v4496_v10 }
 0x1f5   : > { %1924 = vmatpush1.bf16.msra.mxu1 %v4498_v11 }
 0x1f6   : > { %1925 = vmatprep.subr.bf16.mxu1 %v4502_v12 }
 0x1f9   : > { %1926 = vmatpush1.bf16.msra.mxu1 %v4504_v13 }
 0x1fa   : > { %1952 = vmatprep.subr.bf16.mxu1 %v4508_v14  ;;  %v3737_v14 = vld [vmem:[#allocation5 + $0x40] sm:$0xff]  }
 0x1fc   : > { %1944 = vmatmul.mubr.bf16.vlgmr.msra.gmra.mrb[12].mxu1 %v4514_v33  ;;  %v3738_v33 = vld [vmem:[#allocation5 + $0x48] sm:$0xff]  }
 0x1fd   : > { %1953 = vmatpush1.bf16.msra.mxu1 %v3705_v17  ;;  %1984 = vmatprep.mubr.bf16.mxu1 %v3956_v0  ;;  %v3779_v17 = vld [vmem:[%s4742_s7 + $0x10] sm:$0xff]  }
 0x1fe   : > { %1954 = vmatprep.subr.bf16.mxu1 %v3710_v19  ;;  %v3780_v19 = vld [vmem:[%s4742_s7 + $0x18] sm:$0xff]  }
 0x201   : > { %1955 = vmatpush1.bf16.msra.mxu1 %v3708_v20  ;;  %v3749_v20 = vld [vmem:[#allocation5 + $0xa0] sm:$0xff]  }
 0x202   : > { %1956 = vmatprep.subr.bf16.mxu1 %v3713_v21  ;;  %v3781_v21 = vld [vmem:[%s4742_s7 + $0x20] sm:$0xff]  }
 0x205   : > { %1957 = vmatpush1.bf16.msra.mxu1 %v3711_v22  ;;  %v3750_v22 = vld [vmem:[#allocation5 + $0xa8] sm:$0xff]  }
 0x206   : > { %1958 = vmatprep.subr.bf16.mxu1 %v3716_v24  ;;  %v3782_v24 = vld [vmem:[%s4742_s7 + $0x28] sm:$0xff]  }
 0x209   : > { %1959 = vmatpush1.bf16.msra.mxu1 %v3714_v25  ;;  %v3751_v25 = vld [vmem:[#allocation5 + $0xb0] sm:$0xff]  }
 0x20a   : > { %1960 = vmatprep.subr.bf16.mxu1 %v3719_v23  ;;  %v3752_v23 = vld [vmem:[#allocation5 + $0xb8] sm:$0xff]  }
 0x20d   : > { %1961 = vmatpush1.bf16.msra.mxu1 %v3717_v26  ;;  %v3753_v26 = vld [vmem:[#allocation5 + $0xc0] sm:$0xff]  }
 0x20e   : > { %1962 = vmatprep.subr.bf16.mxu1 %v3722_v27 }
 0x211   : > { %1963 = vmatpush1.bf16.msra.mxu1 %v3720_v28  ;;  %v3754_v28 = vld [vmem:[#allocation5 + $0xc8] sm:$0xff]  }
 0x212   : > { %1964 = vmatprep.subr.bf16.mxu1 %v3725_v30  ;;  %v3755_v30 = vld [vmem:[#allocation5 + $0xd0] sm:$0xff]  }
 0x215   : > { %1965 = vmatpush1.bf16.msra.mxu1 %v3723_v31  ;;  %v3756_v31 = vld [vmem:[#allocation5 + $0xd8] sm:$0xff]  }
 0x216   : > { %1966 = vmatprep.subr.bf16.mxu1 %v3728_v32  ;;  %v3757_v32 = vld [vmem:[#allocation5 + $0xe0] sm:$0xff]  }
 0x219   : > { %1967 = vmatpush1.bf16.msra.mxu1 %v3726_v34  ;;  %v3758_v34 = vld [vmem:[#allocation5 + $0xe8] sm:$0xff]  }
 0x21a   : > { %2001 = vmatprep.subr.bf16.mxu1 %v4404_v42  ;;  %v3729_v42 = vld [vmem:[#allocation5] sm:$0xff]  }
 0x21c   : > { %1985 = vmatmul.mubr.bf16.vlgmr.msra.gmra.mrb[12].mxu1 %v4517_v18 }
 0x21d   : > { %2002 = vmatpush1.bf16.msra.mxu1 %v4411_v46  ;;  %2033 = vmatprep.mubr.bf16.mxu1 %v3956_v0  ;;  %v1996_v0 = vshll.u32 %v4517_v18, 16  ;;  %v3957_v46 = vmov 0.0  }
 0x21e   : > { %2003 = vmatprep.subr.bf16.mxu1 %v4413_v47  ;;  %3287 = vmatprep.subr.bf16.mxu0 %v3957_v46  ;;  %v3730_v47 = vld [vmem:[#allocation5 + $0x8] sm:$0xff]  }
 0x21f   : > { %3288 = vmatpush3.bf16.msra.mxu0 %v3729_v42  ;;  %3303 = vmatprep.mubr.msk.bf16.mxu0 %vm3958_vm1, %v3957_v46  ;;  %v3760_v42 = vld [vmem:[#allocation5 + $0xf8] sm:$0xff]  }
 0x220   : > { %3289 = vmatprep.subr.bf16.mxu0 %v3957_v46 }
 0x221   : > { %2004 = vmatpush1.bf16.msra.mxu1 %v4418_v48  ;;  %v1998_v48 = vrot.slane %v1996_v0, 1  ;;  %v3759_v0 = vld [vmem:[#allocation5 + $0xf0] sm:$0xff]  }
 0x222   : > { %2005 = vmatprep.subr.bf16.mxu1 %v4422_v49  ;;  %v1994_v49 = vshrl.u32 %v4517_v18, 16  ;;  %v3748_v18 = vld [vmem:[#allocation5 + $0x98] sm:$0xff]  }
 0x223   : > { %3290 = vmatpush3.bf16.msra.mxu0 %v3730_v47  ;;  %v3761_v47 = vld [vmem:[#allocation5 + $0x100] sm:$0xff]  }
 0x224   : > { %3291 = vmatprep.subr.bf16.mxu0 %v3957_v46 }
 0x225   : > { %2006 = vmatpush1.bf16.msra.mxu1 %v4426_v50  ;;  %v3731_v50 = vld [vmem:[#allocation5 + $0x10] sm:$0xff]  }
 0x226   : > { %2007 = vmatprep.subr.bf16.mxu1 %v4429_v51  ;;  %v1999_v51 = vor.u32 %v1998_v48, %v1994_v49  ;;  %v3762_v49 = vld [vmem:[#allocation5 + $0x108] sm:$0xff]  }
 0x227   : > { %3292 = vmatpush3.bf16.msra.mxu0 %v3731_v50  ;;  %v3763_v50 = vld [vmem:[#allocation5 + $0x110] sm:$0xff]  }
 0x228   : > { %3293 = vmatprep.subr.bf16.mxu0 %v3957_v46 }
 0x229   : > { %2008 = vmatpush1.bf16.msra.mxu1 %v4432_v52  ;;  %v3732_v52 = vld [vmem:[#allocation5 + $0x18] sm:$0xff]  }
 0x22a   : > { %2009 = vmatprep.subr.bf16.mxu1 %v4436_v53  ;;  %v3733_v53 = vld [vmem:[#allocation5 + $0x20] sm:$0xff]  }
 0x22b   : > { %3294 = vmatpush3.bf16.msra.mxu0 %v3732_v52  ;;  %v3765_v52 = vld [vmem:[#allocation5 + $0x120] sm:$0xff]  }
 0x22c   : > { %3295 = vmatprep.subr.bf16.mxu0 %v3957_v46 }
 0x22d   : > { %2010 = vmatpush1.bf16.msra.mxu1 %v4438_v54 }
 0x22e   : > { %2011 = vmatprep.subr.bf16.mxu1 %v4442_v55 }
 0x22f   : > { %3296 = vmatpush3.bf16.msra.mxu0 %v3733_v53  ;;  %v3766_v53 = vld [vmem:[#allocation5 + $0x128] sm:$0xff]  }
 0x230   : > { %3297 = vmatprep.subr.bf16.mxu0 %v3957_v46 }
 0x231   : > { %2012 = vmatpush1.bf16.msra.mxu1 %v4444_v56 }
 0x232   : > { %2013 = vmatprep.subr.bf16.mxu1 %v4448_v57 }
 0x235   : > { %2014 = vmatpush1.bf16.msra.mxu1 %v4450_v58  ;;  %v3734_v58 = vld [vmem:[#allocation5 + $0x28] sm:$0xff]  }
 0x236   : > { %2015 = vmatprep.subr.bf16.mxu1 %v4453_v59  ;;  %3298 = vmatpush3.bf16.msra.mxu0 %v3734_v58  ;;  %v3735_v59 = vld [vmem:[#allocation5 + $0x30] sm:$0xff]   ;;  %v3770_v58 = vld [vmem:[#allocation5 + $0x148] sm:$0xff]  }
 0x237   : > { %3299 = vmatprep.subr.bf16.mxu0 %v3957_v46 }
 0x239   : > { %2016 = vmatpush1.bf16.msra.mxu1 %v4456_v60  ;;  %v3736_v60 = vld [vmem:[#allocation5 + $0x38] sm:$0xff]  }
 0x23a   : > { %3407 = vmatprep.subr.bf16.mxu1 %v3957_v46  ;;  %3300 = vmatpush3.bf16.msra.mxu0 %v3735_v59  ;;  %v3771_v59 = vld [vmem:[#allocation5 + $0x150] sm:$0xff]  }
 0x23b   : > { %3301 = vmatprep.subr.bf16.mxu0 %v3957_v46 }
 0x23c   : > { %2034 = vmatmul.mubr.bf16.vlgmr.msra.gmra.mrb[12].mxu1 %v1999_v51  ;;  %v3764_v51 = vld [vmem:[#allocation5 + $0x118] sm:$0xff]  }
 0x23d   : > { %3423 = vmatprep.mubr.msk.bf16.mxu1 %vm3958_vm1, %v3957_v46  ;;  %3408 = vmatpush3.bf16.msra.mxu1 %v3777_v44 }
 0x23e   : > { %3302 = vmatpush3.bf16.msra.mxu0 %v3736_v60  ;;  %3409 = vmatprep.subr.bf16.mxu1 %v3957_v46  ;;  %v3772_v60 = vld [vmem:[#allocation5 + $0x158] sm:$0xff]  }
 0x23f   : > { %3307 = vmatprep.subr.bf16.mxu0 %v3957_v46 }
 0x241   : > { %3410 = vmatpush3.bf16.msra.mxu1 %v3778_v15 }
 0x242   : > { %3411 = vmatprep.subr.bf16.mxu1 %v3957_v46 }
 0x245   : > { %3412 = vmatpush3.bf16.msra.mxu1 %v3779_v17 }
 0x246   : > { %3413 = vmatprep.subr.bf16.mxu1 %v3957_v46 }
 0x249   : > { %3414 = vmatpush3.bf16.msra.mxu1 %v3780_v19 }
 0x24a   : > { %3415 = vmatprep.subr.bf16.mxu1 %v3957_v46 }
 0x24d   : > { %3416 = vmatpush3.bf16.msra.mxu1 %v3781_v21 }
 0x24e   : > { %3417 = vmatprep.subr.bf16.mxu1 %v3957_v46 }
 0x251   : > { %3418 = vmatpush3.bf16.msra.mxu1 %v3782_v24 }
 0x252   : > { %3419 = vmatprep.subr.bf16.mxu1 %v3957_v46 }
 0x25d   : > { %v1902_v54 = vpop.f32.mrb[8].mxu0 }
 0x25e   : > { %v1904_v55 = vpop.f32.mrb[9].mxu0 }
 0x25f   : > { %v1906_v56 = vpop.f32.mrb[10].mxu0 }
 0x260   : > { %v1907_v57 = vpop.f32.mrb[11].mxu0  ;;  %v3769_v56 = vld [vmem:[#allocation5 + $0x140] sm:$0xff]  }
 0x2af   : > { %v1756_v61 = vpop.f32.mrb[8].mxu1 }
 0x2b0   : > { %v3447_v62 = vadd.f32 %v1902_v54, %v1756_v61  ;;  %v1758_v63 = vpop.f32.mrb[9].mxu1  ;;  %v3767_v54 = vld [vmem:[#allocation5 + $0x130] sm:$0xff]   ;;  %v3773_v61 = vld [vmem:[#allocation5 + $0x160] sm:$0xff]  }
 0x2b1   : > { %v3448_v1 = vadd.f32 %v1904_v55, %v1758_v63  ;;  %v1760_v2 = vpop.f32.mrb[10].mxu1  ;;  %v3768_v55 = vld [vmem:[#allocation5 + $0x138] sm:$0xff]   ;;  %v3775_v63 = vld [vmem:[#allocation5 + $0x170] sm:$0xff]  }
 0x2b2   : > { %v1761_v3 = vpop.f32.mrb[11].mxu1 }
 0x2b3   : > { %v3783_v3 = vld [vmem:[%s4742_s7 + $0x30] sm:$0xff]  }
 0x2b4   : > { %3420 = vmatpush3.bf16.msra.mxu1 %v3783_v3 }
 0x2b5   : > { %3421 = vmatprep.subr.bf16.mxu1 %v3957_v46 }
 0x30f   : > { %v2035_v4 = vpop.f32.mrb[12].mxu1 }
 0x310   : > { %v2044_v5 = vmax.f32 %v3447_v62, %v2035_v4  ;;  %v2037_v6 = vpop.f32.mrb[13].mxu1  ;;  %v3774_v62 = vld [vmem:[#allocation5 + $0x168] sm:$0xff]   ;;  %v3784_v4 = vld [vmem:[%s4742_s7 + $0x38] sm:$0xff]  }
 0x311   : > { %v2045_v7 = vmax.f32 %v3448_v1, %v2037_v6  ;;  %v2039_v8 = vpop.f32.mrb[14].mxu1  ;;  %v3776_v1 = vld [vmem:[#allocation5 + $0x178] sm:$0xff]   ;;  %3422 = vmatpush3.bf16.msra.mxu1 %v3784_v4 }
 0x312   : > { %v2040_v10 = vpop.f32.mrb[15].mxu1  ;;  %3427 = vmatprep.subr.bf16.mxu1 %v3957_v46 }
 0x313   : > { %v2046_v11 = vmax.f32 %v2044_v5, %v2045_v7  ;;  %v2057_v5 = vld [vmem:[%s4741_s6] sm:$0x1] }
 0x315   : > { %v2054_v12 = vadd.f32 %v3146_v9, %v2046_v11 }
 0x317   : > { %v2055_v13 = vmax.f32 %v2054_v12, 0.0  ;;  %v3785_v12 = vld [vmem:[#allocation7] sm:$0xff]  }
 0x319   : > { %v4578_v29 = vpack.c.bf16 %v2055_v13, %v2055_v13 }
 0x31b   : > { %3304 = vmatmul.mubr.bf16.vlgmr.msra.gmra.mrb[12].mxu0 %v4578_v29  ;;  %v4591_v43 = vshrl.u32 %v4578_v29, 16  ;;  %v2291_v27 = vrot.slane %v4578_v29, 1  ;;  %v2507_v57 = vrot.slane %v4578_v29, 2  ;;  %v3787_v29 = vld [vmem:[#allocation7 + $0x10] sm:$0xff]  }
 0x31c   : > { %3308 = vmatpush3.bf16.msra.mxu0 %v3737_v14  ;;  %3323 = vmatprep.mubr.msk.bf16.mxu0 %vm3958_vm1, %v3957_v46  ;;  %v3786_v14 = vld [vmem:[#allocation7 + $0x8] sm:$0xff]  }
 0x31d   : > { %3309 = vmatprep.subr.bf16.mxu0 %v3957_v46  ;;  %v2399_v48 = vrot.slane %v4591_v43, 1  ;;  %v2615_v2 = vrot.slane %v4591_v43, 2 }
 0x320   : > { %3310 = vmatpush3.bf16.msra.mxu0 %v3738_v33  ;;  %v3788_v33 = vld [vmem:[#allocation7 + $0x18] sm:$0xff]  }
 0x321   : > { %3311 = vmatprep.subr.bf16.mxu0 %v3957_v46 }
 0x324   : > { %3312 = vmatpush3.bf16.msra.mxu0 %v3739_v35  ;;  %v3789_v35 = vld [vmem:[#allocation7 + $0x20] sm:$0xff]  }
 0x325   : > { %3313 = vmatprep.subr.bf16.mxu0 %v3957_v46 }
 0x328   : > { %3314 = vmatpush3.bf16.msra.mxu0 %v3740_v36  ;;  %v3790_v36 = vld [vmem:[#allocation7 + $0x28] sm:$0xff]  }
 0x329   : > { %3315 = vmatprep.subr.bf16.mxu0 %v3957_v46 }
 0x32c   : > { %3316 = vmatpush3.bf16.msra.mxu0 %v3741_v37  ;;  %v3791_v37 = vld [vmem:[#allocation7 + $0x30] sm:$0xff]  }
 0x32d   : > { %3317 = vmatprep.subr.bf16.mxu0 %v3957_v46 }
 0x330   : > { %3318 = vmatpush3.bf16.msra.mxu0 %v3742_v38  ;;  %v3792_v38 = vld [vmem:[#allocation7 + $0x38] sm:$0xff]  }
 0x331   : > { %3319 = vmatprep.subr.bf16.mxu0 %v3957_v46 }
 0x334   : > { %3320 = vmatpush3.bf16.msra.mxu0 %v3743_v39  ;;  %v2708_v39 = vld [vmem:[%s4743_s8] sm:$0x1] }
 0x335   : > { %3321 = vmatprep.subr.bf16.mxu0 %v3957_v46 }
 0x338   : > { %3322 = vmatpush3.bf16.msra.mxu0 %v3744_v40 }
 0x339   : > { %3327 = vmatprep.subr.bf16.mxu0 %v3957_v46 }
 0x33b   : > { %3324 = vmatmul.mubr.bf16.vlgmr.msra.gmra.mrb[12].mxu0 %v4591_v43 }
 0x33c   : > { %3328 = vmatpush3.bf16.msra.mxu0 %v3745_v41  ;;  %3343 = vmatprep.mubr.msk.bf16.mxu0 %vm3958_vm1, %v3957_v46 }
 0x33d   : > { %3329 = vmatprep.subr.bf16.mxu0 %v3957_v46 }
 0x340   : > { %3330 = vmatpush3.bf16.msra.mxu0 %v3746_v45 }
 0x341   : > { %3331 = vmatprep.subr.bf16.mxu0 %v3957_v46 }
 0x344   : > { %3332 = vmatpush3.bf16.msra.mxu0 %v3747_v16 }
 0x345   : > { %3333 = vmatprep.subr.bf16.mxu0 %v3957_v46 }
 0x348   : > { %3334 = vmatpush3.bf16.msra.mxu0 %v3748_v18 }
 0x349   : > { %3335 = vmatprep.subr.bf16.mxu0 %v3957_v46 }
 0x34c   : > { %3336 = vmatpush3.bf16.msra.mxu0 %v3749_v20 }
 0x34d   : > { %3337 = vmatprep.subr.bf16.mxu0 %v3957_v46 }
 0x350   : > { %3338 = vmatpush3.bf16.msra.mxu0 %v3750_v22 }
 0x351   : > { %3339 = vmatprep.subr.bf16.mxu0 %v3957_v46 }
 0x354   : > { %3340 = vmatpush3.bf16.msra.mxu0 %v3751_v25 }
 0x355   : > { %3341 = vmatprep.subr.bf16.mxu0 %v3957_v46 }
 0x358   : > { %3342 = vmatpush3.bf16.msra.mxu0 %v3752_v23 }
 0x359   : > { %3347 = vmatprep.subr.bf16.mxu0 %v3957_v46 }
 0x35b   : > { %3344 = vmatmul.mubr.bf16.vlgmr.msra.gmra.mrb[12].mxu0 %v2291_v27 }
 0x35c   : > { %3348 = vmatpush3.bf16.msra.mxu0 %v3753_v26  ;;  %3363 = vmatprep.mubr.msk.bf16.mxu0 %vm3958_vm1, %v3957_v46 }
 0x35d   : > { %3349 = vmatprep.subr.bf16.mxu0 %v3957_v46 }
 0x360   : > { %3350 = vmatpush3.bf16.msra.mxu0 %v3754_v28 }
 0x361   : > { %3351 = vmatprep.subr.bf16.mxu0 %v3957_v46 }
 0x364   : > { %3352 = vmatpush3.bf16.msra.mxu0 %v3755_v30 }
 0x365   : > { %3353 = vmatprep.subr.bf16.mxu0 %v3957_v46 }
 0x368   : > { %3354 = vmatpush3.bf16.msra.mxu0 %v3756_v31 }
 0x369   : > { %3355 = vmatprep.subr.bf16.mxu0 %v3957_v46 }
 0x36c   : > { %3356 = vmatpush3.bf16.msra.mxu0 %v3757_v32 }
 0x36d   : > { %3357 = vmatprep.subr.bf16.mxu0 %v3957_v46 }
 0x370   : > { %3358 = vmatpush3.bf16.msra.mxu0 %v3758_v34 }
 0x371   : > { %3359 = vmatprep.subr.bf16.mxu0 %v3957_v46 }
 0x374   : > { %3360 = vmatpush3.bf16.msra.mxu0 %v3759_v0 }
 0x375   : > { %3361 = vmatprep.subr.bf16.mxu0 %v3957_v46 }
 0x378   : > { %3362 = vmatpush3.bf16.msra.mxu0 %v3760_v42 }
 0x379   : > { %3367 = vmatprep.subr.bf16.mxu0 %v3957_v46 }
 0x37b   : > { %3364 = vmatmul.mubr.bf16.vlgmr.msra.gmra.mrb[12].mxu0 %v2399_v48 }
 0x37c   : > { %3368 = vmatpush3.bf16.msra.mxu0 %v3761_v47  ;;  %3383 = vmatprep.mubr.msk.bf16.mxu0 %vm3958_vm1, %v3957_v46 }
 0x37d   : > { %3369 = vmatprep.subr.bf16.mxu0 %v3957_v46 }
 0x380   : > { %3370 = vmatpush3.bf16.msra.mxu0 %v3762_v49 }
 0x381   : > { %3371 = vmatprep.subr.bf16.mxu0 %v3957_v46 }
 0x384   : > { %3372 = vmatpush3.bf16.msra.mxu0 %v3763_v50 }
 0x385   : > { %3373 = vmatprep.subr.bf16.mxu0 %v3957_v46 }
 0x388   : > { %3374 = vmatpush3.bf16.msra.mxu0 %v3764_v51 }
 0x389   : > { %3375 = vmatprep.subr.bf16.mxu0 %v3957_v46 }
 0x38c   : > { %3376 = vmatpush3.bf16.msra.mxu0 %v3765_v52 }
 0x38d   : > { %3377 = vmatprep.subr.bf16.mxu0 %v3957_v46 }
 0x390   : > { %3378 = vmatpush3.bf16.msra.mxu0 %v3766_v53 }
 0x391   : > { %3379 = vmatprep.subr.bf16.mxu0 %v3957_v46 }
 0x394   : > { %3380 = vmatpush3.bf16.msra.mxu0 %v3767_v54 }
 0x395   : > { %3381 = vmatprep.subr.bf16.mxu0 %v3957_v46 }
 0x398   : > { %3382 = vmatpush3.bf16.msra.mxu0 %v3768_v55 }
 0x399   : > { %3387 = vmatprep.subr.bf16.mxu0 %v3957_v46 }
 0x39b   : > { %3384 = vmatmul.mubr.bf16.vlgmr.msra.gmra.mrb[12].mxu0 %v2507_v57 }
 0x39c   : > { %3388 = vmatpush3.bf16.msra.mxu0 %v3769_v56  ;;  %3403 = vmatprep.mubr.msk.bf16.mxu0 %vm3958_vm1, %v3957_v46 }
 0x39d   : > { %3389 = vmatprep.subr.bf16.mxu0 %v3957_v46 }
 0x3a0   : > { %3390 = vmatpush3.bf16.msra.mxu0 %v3770_v58 }
 0x3a1   : > { %3391 = vmatprep.subr.bf16.mxu0 %v3957_v46 }
 0x3a4   : > { %3392 = vmatpush3.bf16.msra.mxu0 %v3771_v59 }
 0x3a5   : > { %3393 = vmatprep.subr.bf16.mxu0 %v3957_v46 }
 0x3a8   : > { %3394 = vmatpush3.bf16.msra.mxu0 %v3772_v60 }
 0x3a9   : > { %3395 = vmatprep.subr.bf16.mxu0 %v3957_v46 }
 0x3ac   : > { %3396 = vmatpush3.bf16.msra.mxu0 %v3773_v61 }
 0x3ad   : > { %3397 = vmatprep.subr.bf16.mxu0 %v3957_v46 }
 0x3b0   : > { %3398 = vmatpush3.bf16.msra.mxu0 %v3774_v62 }
 0x3b1   : > { %3399 = vmatprep.subr.bf16.mxu0 %v3957_v46 }
 0x3b4   : > { %3400 = vmatpush3.bf16.msra.mxu0 %v3775_v63 }
 0x3b5   : > { %3401 = vmatprep.subr.bf16.mxu0 %v3957_v46 }
 0x3b8   : > { %3402 = vmatpush3.bf16.msra.mxu0 %v3776_v1 }
 0x3bb   : > { %3404 = vmatmul.mubr.bf16.vlgmr.msra.gmra.mrb[12].mxu0 %v2615_v2 }
 0x48e   : > { %v2699_v6 = vpop.f32.mrb[12].mxu0 }
 0x48f   : > { %v3449_v7 = vadd.f32 %v2699_v6, %v2057_v5  ;;  %v3405_v8 = vpop.f32.mrb[13].mxu0 }
 0x490   : > { %v2702_v9 = vpop.f32.mrb[14].mxu0 }
 0x491   : > { %v2706_v10 = vmax.f32 %v3449_v7, 0.0  ;;  %v3406_v11 = vpop.f32.mrb[15].mxu0 }
 0x493   : > { %v2707_v13 = vpack.c.bf16 %v2706_v10, %v2706_v10 }
 0x495   : > { %3424 = vmatmul.mubr.bf16.vlgmr.msra.gmra.mrb[16].mxu1 %v2707_v13 }
 0x496   : > { %3428 = vmatpush3.bf16.msra.mxu1 %v3785_v12  ;;  %3443 = vmatprep.mubr.msk.bf16.mxu1 %vm3958_vm1, %v3957_v46 }
 0x497   : > { %3429 = vmatprep.subr.bf16.mxu1 %v3957_v46 }
 0x49a   : > { %3430 = vmatpush3.bf16.msra.mxu1 %v3786_v14 }
 0x49b   : > { %3431 = vmatprep.subr.bf16.mxu1 %v3957_v46 }
 0x49e   : > { %3432 = vmatpush3.bf16.msra.mxu1 %v3787_v29 }
 0x49f   : > { %3433 = vmatprep.subr.bf16.mxu1 %v3957_v46 }
 0x4a2   : > { %3434 = vmatpush3.bf16.msra.mxu1 %v3788_v33 }
 0x4a3   : > { %3435 = vmatprep.subr.bf16.mxu1 %v3957_v46 }
 0x4a6   : > { %3436 = vmatpush3.bf16.msra.mxu1 %v3789_v35 }
 0x4a7   : > { %3437 = vmatprep.subr.bf16.mxu1 %v3957_v46 }
 0x4aa   : > { %3438 = vmatpush3.bf16.msra.mxu1 %v3790_v36 }
 0x4ab   : > { %3439 = vmatprep.subr.bf16.mxu1 %v3957_v46 }
 0x4ae   : > { %3440 = vmatpush3.bf16.msra.mxu1 %v3791_v37 }
 0x4af   : > { %3441 = vmatprep.subr.bf16.mxu1 %v3957_v46  ;;  %v2816_v46 = vld [vmem:[%s4745_s10] sm:$0x1] }
 0x4b2   : > { %3442 = vmatpush3.bf16.msra.mxu1 %v3792_v38 }
 0x568   : > { %v2807_v40 = vpop.f32.mrb[16].mxu1 }
 0x569   : > { %v2813_v41 = vadd.f32 %v2807_v40, %v2708_v39  ;;  %v3425_v43 = vpop.f32.mrb[17].mxu1 }
 0x56a   : > { %v2810_v44 = vpop.f32.mrb[18].mxu1 }
 0x56b   : > { %v2814_v45 = vmax.f32 %v2813_v41, 0.0  ;;  %v3426_v15 = vpop.f32.mrb[19].mxu1 }
 0x56d   : > { %v2815_v16 = vpack.c.bf16 %v2814_v45, %v2814_v45 }
 0x56f   : > { %3444 = vmatmul.mubr.bf16.vlgmr.msra.gmra.mrb[20].mxu1 %v2815_v16 }
 0x642   : > { %v2915_v17 = vpop.f32.mrb[20].mxu1 }
 0x643   : > { %v2921_v18 = vadd.f32 %v2915_v17, %v2816_v46  ;;  %v3445_v19 = vpop.f32.mrb[21].mxu1 }
 0x644   : > { %v2918_v20 = vpop.f32.mrb[22].mxu1 }
 0x645   : > { %2922 = vst [vmem:[%s422_s23] sm:$0x1] %v2921_v18  ;;  %v3446_v21 = vpop.f32.mrb[23].mxu1 }
 0x646   : > { %3890 = shalt.err (!%p3887_p11)
}
 0x647   : > { %s3891_s5 = scalar_lea.hbm %s4693_s14, 16  ;;  %s3895_s13 = scalar_lea.hbm %s4746_s11, 32 }
 0x648   : > { %p3892_p5 = scmp.ne.s32.totalorder %s4693_s14, %s3891_s5  ;;  %p3896_p9 = scmp.lt.u32.totalorder %s4693_s14, %s4746_s11 }
 0x649   : > { %p3897_p10 = scmp.lt.u32.totalorder %s3895_s13, %s3891_s5  ;;  %p3899_p12 = scmp.lt.u32.totalorder %s3891_s5, %s4693_s14 }
 0x64a   : > { %p3893_p0 = pnand %p3892_p5, %p4778_p1 }
 0x64b   : > { %p3898_p13 = por %p3897_p10, %p3896_p9 }
 0x64c   : > { %p3894_p6 = pneg %p3893_p0 }
 0x64d   : > { %p3900_p2 = por %p3899_p12, %p3898_p13 }
 0x64f   : > { %p3901_p3 = pnand %p3900_p2, %p3894_p6 }
 0x651   : > { %3904 = shalt.err (!%p3901_p3)
}
 0x652   : > { %3558 = dma.vmem_to_hbm [thread:$0]  (%p4778_p1), %s4695_s19, 16, %s4693_s14, %s2924_s16  }
 0x653 PF: > { %s4779_s15 = sld [smem:[#allocation14_spill]]  ;;  %s4780_s20 = sld [smem:[#allocation12_spill]] }
 0x654   : > { %s4781_s23 = sld [smem:[#allocation17_spill]] }
 0x659   : > { %p3580_p4 = scmp.ge.s32.totalorder %s4779_s15, 2  ;;  %s2948_s24 = sand.u32 1, %s4780_s20  }
 0x65a   : > { %p4782_p7 = scmp.ne.s32.totalorder %s4781_s23, 0  ;;  %s2949_s25 = scalar_lea.sflag [#allocation4], %s2948_s24 }
 0x65c   : > { %p3571_p8 = pnand %p3580_p4, %p4782_p7 }
 0x65e   : > { %3930 = dma.done.wait (!%p3571_p8), %s2949_s25, 16  }
 0x65f   : > { %3932 = vsyncadd (!%p3571_p8), %s2949_s25, 4294967280  ;;  %s4783_s20 = sld [smem:[#allocation15_spill]]  ;;  %s4784_s21 = sld [smem:[#allocation13_spill]] }
 0x660   : > { %s4785_s19 = sld [smem:[#allocation16_spill]]  ;;  %s4786_s17 = smov %s3939_s18 }
 0x665   : > { %p23_p11 = scmp.ge.s32.totalorder %s4783_s20, 4   ;;  %s4787_s18 = smov %s4784_s21 }
 0x667   :  { %25 = sbr.rel (!%p23_p11) target bundleno = 7 (0x7), region = 126 }
 0x66e   :  { %2953 = vsyncpa [#allocation3], 1 }
 0x66f   :  { %2955 = vsyncpa [#allocation3 + $0x1], 1 }
 0x670   :  { %2956 = vsyncpa [#allocation6], 1 }
 0x671   :  { %2957 = vsyncpa [#allocation4], 1 }
 0x672   :  { %2959 = vsyncpa [#allocation4 + $0x1], 1 }

</bundles_post_ra>
